<compile_context>
chip_gen: v6e
topology: v6e:2x2x1
jax: 0.10.0
libtpu: 0.0.40
codegen_flags: <defaults>
</compile_context>

<pallas_src>
import functools

import jax
import jax.numpy as jnp
from jax.experimental import pallas as pl
from jax.experimental.pallas import tpu as pltpu


# ------------------------------ helpers -------------------------------------

def _row_tile(m):
    """Pick a row-tile that divides m; cap at 512 rows (safe for v7x VMEM)."""
    if m <= 512:
        return m
    for t in (512, 256, 128):
        if m % t == 0:
            return t
    return m


def _gelu(y):
    # exact (erf-based) GELU, matching torch.nn.GELU default
    return 0.5 * y * (1.0 + jax.lax.erf(y * 0.7071067811865476))


# --------------------------- fused Pallas kernels ----------------------------

def _ln_linear_kernel(*refs, eps, use_ln, use_bias, activation):
    """Optional-LN -> matmul -> optional bias -> optional GELU."""
    it = iter(refs)
    x_ref = next(it)
    g_ref = next(it) if use_ln else None
    bln_ref = next(it) if use_ln else None
    w_ref = next(it)
    bias_ref = next(it) if use_bias else None
    o_ref = next(it)

    x = x_ref[...].astype(jnp.float32)
    if use_ln:
        mu = jnp.mean(x, axis=-1, keepdims=True)
        var = jnp.mean((x - mu) ** 2, axis=-1, keepdims=True)
        xn = (x - mu) * jax.lax.rsqrt(var + eps) * g_ref[...] + bln_ref[...]
    else:
        xn = x
    y = jnp.dot(xn.astype(jnp.bfloat16), w_ref[...],
                preferred_element_type=jnp.float32)
    if use_bias:
        y = y + bias_ref[...]
    if activation == "gelu":
        y = _gelu(y)
    o_ref[...] = y.astype(o_ref.dtype)


def pallas_ln_linear(x, w, *, ln_g=None, ln_b=None, bias=None,
                     activation=None, eps=1e-5):
    M, K = x.shape
    N = w.shape[1]
    use_ln = ln_g is not None
    use_bias = bias is not None
    tm = _row_tile(M)

    args = [x]
    in_specs = [pl.BlockSpec((tm, K), lambda i: (i, 0))]
    if use_ln:
        args += [ln_g.reshape(1, K), ln_b.reshape(1, K)]
        in_specs += [pl.BlockSpec((1, K), lambda i: (0, 0)),
                     pl.BlockSpec((1, K), lambda i: (0, 0))]
    args.append(w.astype(jnp.bfloat16))
    in_specs.append(pl.BlockSpec((K, N), lambda i: (0, 0)))
    if use_bias:
        args.append(bias.reshape(1, N))
        in_specs.append(pl.BlockSpec((1, N), lambda i: (0, 0)))

    kernel = functools.partial(_ln_linear_kernel, eps=eps, use_ln=use_ln,
                               use_bias=use_bias, activation=activation)
    return pl.pallas_call(
        kernel,
        grid=(M // tm,),
        in_specs=in_specs,
        out_specs=pl.BlockSpec((tm, N), lambda i: (i, 0)),
        out_shape=jax.ShapeDtypeStruct((M, N), jnp.float32),
        compiler_params=pltpu.CompilerParams(dimension_semantics=("parallel",)),
    )(*args)


def _attn_block_kernel(x_ref, g_ref, bln_ref, wqkv_ref, wout_ref, bout_ref,
                       o_ref, *, heads, dim_head, eps):
    """Fused PreNorm(Attention) + residual for one batch element (all heads)."""
    x = x_ref[0].astype(jnp.float32)                          # (n, d)
    mu = jnp.mean(x, axis=-1, keepdims=True)
    var = jnp.mean((x - mu) ** 2, axis=-1, keepdims=True)
    xn = (x - mu) * jax.lax.rsqrt(var + eps) * g_ref[...] + bln_ref[...]

    qkv = jnp.dot(xn.astype(jnp.bfloat16), wqkv_ref[...],
                  preferred_element_type=jnp.float32)         # (n, 3*inner)
    inner = heads * dim_head
    scale = dim_head ** -0.5

    head_outs = []
    for h in range(heads):                                    # static unroll
        lo = h * dim_head
        hi = lo + dim_head
        q = qkv[:, lo:hi].astype(jnp.bfloat16)
        k = qkv[:, inner + lo:inner + hi].astype(jnp.bfloat16)
        v = qkv[:, 2 * inner + lo:2 * inner + hi].astype(jnp.bfloat16)
        s = jax.lax.dot_general(q, k, (((1,), (1,)), ((), ())),
                                preferred_element_type=jnp.float32) * scale
        s = s - jnp.max(s, axis=-1, keepdims=True)
        p = jnp.exp(s)
        p = p * pl.reciprocal(jnp.sum(p, axis=-1, keepdims=True), approx=True)
        head_outs.append(jnp.dot(p.astype(jnp.bfloat16), v,
                                 preferred_element_type=jnp.float32))
    o = jnp.concatenate(head_outs, axis=-1)                   # (n, inner)

    out = jnp.dot(o.astype(jnp.bfloat16), wout_ref[...],
                  preferred_element_type=jnp.float32) + bout_ref[...]
    o_ref[0] = (x + out).astype(o_ref.dtype)                  # fused residual


def pallas_attention(x, p, heads, dim_head, eps=1e-5):
    """x: (B, n, d) -> PreNorm(Attention)(x) + x, one fused kernel, grid over B."""
    B, n, d = x.shape
    inner = heads * dim_head
    kernel = functools.partial(_attn_block_kernel, heads=heads,
                               dim_head=dim_head, eps=eps)
    return pl.pallas_call(
        kernel,
        grid=(B,),
        in_specs=[
            pl.BlockSpec((1, n, d), lambda i: (i, 0, 0)),
            pl.BlockSpec((1, d), lambda i: (0, 0)),
            pl.BlockSpec((1, d), lambda i: (0, 0)),
            pl.BlockSpec((d, 3 * inner), lambda i: (0, 0)),
            pl.BlockSpec((inner, d), lambda i: (0, 0)),
            pl.BlockSpec((1, d), lambda i: (0, 0)),
        ],
        out_specs=pl.BlockSpec((1, n, d), lambda i: (i, 0, 0)),
        out_shape=jax.ShapeDtypeStruct((B, n, d), jnp.float32),
        compiler_params=pltpu.CompilerParams(dimension_semantics=("parallel",)),
    )(x, p["ln_g"].reshape(1, d), p["ln_b"].reshape(1, d),
      p["w_qkv"].astype(jnp.bfloat16), p["w_out"].astype(jnp.bfloat16),
      p["b_out"].reshape(1, d))


def _ff_kernel(x_ref, g_ref, bln_ref, w1_ref, b1_ref, w2_ref, b2_ref, o_ref,
               *, eps):
    """Fused PreNorm(FeedForward) + residual: LN -> W1 -> GELU -> W2 -> +x."""
    x = x_ref[...].astype(jnp.float32)                        # (tm, d)
    mu = jnp.mean(x, axis=-1, keepdims=True)
    var = jnp.mean((x - mu) ** 2, axis=-1, keepdims=True)
    xn = (x - mu) * jax.lax.rsqrt(var + eps) * g_ref[...] + bln_ref[...]
    h = jnp.dot(xn.astype(jnp.bfloat16), w1_ref[...],
                preferred_element_type=jnp.float32) + b1_ref[...]
    h = _gelu(h)
    y = jnp.dot(h.astype(jnp.bfloat16), w2_ref[...],
                preferred_element_type=jnp.float32) + b2_ref[...]
    o_ref[...] = (x + y).astype(o_ref.dtype)                  # fused residual


def pallas_feedforward(x, p, eps=1e-5):
    B, n, d = x.shape
    M = B * n
    hidden = p["w1"].shape[1]
    tm = _row_tile(M)
    out = pl.pallas_call(
        functools.partial(_ff_kernel, eps=eps),
        grid=(M // tm,),
        in_specs=[
            pl.BlockSpec((tm, d), lambda i: (i, 0)),
            pl.BlockSpec((1, d), lambda i: (0, 0)),
            pl.BlockSpec((1, d), lambda i: (0, 0)),
            pl.BlockSpec((d, hidden), lambda i: (0, 0)),
            pl.BlockSpec((1, hidden), lambda i: (0, 0)),
            pl.BlockSpec((hidden, d), lambda i: (0, 0)),
            pl.BlockSpec((1, d), lambda i: (0, 0)),
        ],
        out_specs=pl.BlockSpec((tm, d), lambda i: (i, 0)),
        out_shape=jax.ShapeDtypeStruct((M, d), jnp.float32),
        compiler_params=pltpu.CompilerParams(dimension_semantics=("parallel",)),
    )(x.reshape(M, d), p["ln_g"].reshape(1, d), p["ln_b"].reshape(1, d),
      p["w1"].astype(jnp.bfloat16), p["b1"].reshape(1, hidden),
      p["w2"].astype(jnp.bfloat16), p["b2"].reshape(1, d))
    return out.reshape(B, n, d)


def _p2p_kernel(x_ref, g_ref, bln_ref, w_ref, bias_ref, o_ref, *, eps):
    """pixel_to_patch: per-pixel LayerNorm -> flatten (n d) -> Linear, fused.
    The flatten+matmul is realized as a static sum over pixel slices."""
    x = x_ref[...].astype(jnp.float32)                        # (tb, L, pd)
    mu = jnp.mean(x, axis=-1, keepdims=True)
    var = jnp.mean((x - mu) ** 2, axis=-1, keepdims=True)
    xn = ((x - mu) * jax.lax.rsqrt(var + eps) * g_ref[...]
          + bln_ref[...]).astype(jnp.bfloat16)
    tb, n_out = o_ref.shape
    L = x.shape[1]
    acc = jnp.zeros((tb, n_out), jnp.float32)
    for l in range(L):                                        # static unroll
        acc = acc + jnp.dot(xn[:, l, :], w_ref[l],
                            preferred_element_type=jnp.float32)
    o_ref[...] = (acc + bias_ref[...]).astype(o_ref.dtype)


def pallas_pixel_to_patch(pixels, layer, eps=1e-5):
    Bp, L, pd = pixels.shape
    N = layer["p2p_w"].shape[1]
    w3 = layer["p2p_w"].reshape(L, pd, N).astype(jnp.bfloat16)
    tb = _row_tile(Bp)
    return pl.pallas_call(
        functools.partial(_p2p_kernel, eps=eps),
        grid=(Bp // tb,),
        in_specs=[
            pl.BlockSpec((tb, L, pd), lambda i: (i, 0, 0)),
            pl.BlockSpec((1, 1, pd), lambda i: (0, 0, 0)),
            pl.BlockSpec((1, 1, pd), lambda i: (0, 0, 0)),
            pl.BlockSpec((L, pd, N), lambda i: (0, 0, 0)),
            pl.BlockSpec((1, N), lambda i: (0, 0)),
        ],
        out_specs=pl.BlockSpec((tb, N), lambda i: (i, 0)),
        out_shape=jax.ShapeDtypeStruct((Bp, N), jnp.float32),
        compiler_params=pltpu.CompilerParams(dimension_semantics=("parallel",)),
    )(pixels, layer["p2p_ln_g"].reshape(1, 1, pd),
      layer["p2p_ln_b"].reshape(1, 1, pd), w3, layer["p2p_b"].reshape(1, N))


# ------------------------------ layout glue ----------------------------------

def to_pixel_patches(x, patch_size, pixel_width):
    """JAX glue for: Rearrange('b c (p1 h) (p2 w) -> (b h w) c p1 p2')
       -> nn.Unfold(pixel_width, stride=pixel_width) -> Rearrange('... c n -> ... n c')."""
    b, c, H, W = x.shape
    np_ = H // patch_size
    P, pw = patch_size, pixel_width
    nb = P // pw
    # 'b c (p1 h) (p2 w) -> (b h w) c p1 p2'   (p1/p2 are the OUTER factors)
    x = x.reshape(b, c, P, np_, P, np_)
    x = x.transpose(0, 3, 5, 1, 2, 4).reshape(b * np_ * np_, c, P, P)
    # nn.Unfold(pw, stride=pw): (B', c*pw*pw, nb*nb); channel dim order (c, ki, kj)
    Bp = x.shape[0]
    x = x.reshape(Bp, c, nb, pw, nb, pw)            # (Bp, c, bi, ki, bj, kj)
    x = x.transpose(0, 1, 3, 5, 2, 4).reshape(Bp, c * pw * pw, nb * nb)
    # '... c n -> ... n c'
    return x.transpose(0, 2, 1)                     # (Bp, num_pixels, c*pw*pw)


# --------------------------------- forward -----------------------------------

def tnt_forward(x, params, cfg):
    image_size = cfg["image_size"]
    patch_size = cfg["patch_size"]
    pixel_size = cfg["pixel_size"]
    heads = cfg["heads"]
    dim_head = cfg["dim_head"]
    patch_dim = cfg["patch_dim"]
    pixel_dim = cfg["pixel_dim"]

    b = x.shape[0]
    num_patches = image_size // patch_size
    pixel_width = patch_size // pixel_size

    pix_in = to_pixel_patches(x, patch_size, pixel_width)    # (b*np*np, L, 3*pw*pw)
    Bp, L, Kin = pix_in.shape
    pixels = pallas_ln_linear(pix_in.reshape(Bp * L, Kin),
                              params["pix_proj_w"],
                              bias=params["pix_proj_b"])
    pixels = pixels.reshape(Bp, L, pixel_dim)

    patches = params["patch_tokens"][None] + params["patch_pos_emb"][None]
    patches = jnp.broadcast_to(patches, (b,) + params["patch_tokens"].shape)
    pixels = pixels + params["pixel_pos_emb"][None]

    for layer in params["layers"]:
        # pixel transformer (residuals fused inside the kernels)
        pixels = pallas_attention(pixels, layer["pix_attn"], heads, dim_head)
        pixels = pallas_feedforward(pixels, layer["pix_ff"])

        # pixel_to_patch residual: LN -> flatten (n d) -> Linear (fused kernel)
        pr = pallas_pixel_to_patch(pixels, layer)             # (Bp, patch_dim)
        pr = pr.reshape(b, num_patches * num_patches, patch_dim)
        # F.pad(..., (0,0,1,0)) + add  ==  add into rows 1.. (cls row untouched)
        patches = patches.at[:, 1:, :].add(pr)

        # patch transformer
        patches = pallas_attention(patches, layer["patch_attn"], heads, dim_head)
        patches = pallas_feedforward(patches, layer["patch_ff"])

    cls = patches[:, 0]                                       # (b, patch_dim)
    return pallas_ln_linear(cls, params["head_w"],
                            ln_g=params["head_ln_g"], ln_b=params["head_ln_b"],
                            bias=params["head_b"])            # (b, num_classes)


# ------------------------------ parameter init --------------------------------

def init_params(key, cfg):
    image_size = cfg["image_size"]
    patch_size = cfg["patch_size"]
    pixel_size = cfg["pixel_size"]
    patch_dim = cfg["patch_dim"]
    pixel_dim = cfg["pixel_dim"]
    heads = cfg["heads"]
    dim_head = cfg["dim_head"]
    depth = cfg["depth"]
    num_classes = cfg["num_classes"]

    num_patch_tokens = (image_size // patch_size) ** 2
    pixel_width = patch_size // pixel_size
    num_pixels = pixel_width ** 2
    inner = heads * dim_head

    keys = iter(jax.random.split(key, 256))

    def nrm(shape, scale=1.0):
        return jax.random.normal(next(keys), shape, jnp.float32) * scale

    def attn_block(dim):
        return {
            "ln_g": jnp.ones((dim,), jnp.float32),
            "ln_b": jnp.zeros((dim,), jnp.float32),
            "w_qkv": nrm((dim, 3 * inner), 0.02),
            "w_out": nrm((inner, dim), 0.02),
            "b_out": jnp.zeros((dim,), jnp.float32),
        }

    def ff_block(dim):
        return {
            "ln_g": jnp.ones((dim,), jnp.float32),
            "ln_b": jnp.zeros((dim,), jnp.float32),
            "w1": nrm((dim, 4 * dim), 0.02),
            "b1": jnp.zeros((4 * dim,), jnp.float32),
            "w2": nrm((4 * dim, dim), 0.02),
            "b2": jnp.zeros((dim,), jnp.float32),
        }

    params = {
        "patch_tokens": nrm((num_patch_tokens + 1, patch_dim)),
        "patch_pos_emb": nrm((num_patch_tokens + 1, patch_dim)),
        "pixel_pos_emb": nrm((num_pixels, pixel_dim)),
        "pix_proj_w": nrm((3 * pixel_width ** 2, pixel_dim), 0.02),
        "pix_proj_b": jnp.zeros((pixel_dim,), jnp.float32),
        "layers": [],
        "head_ln_g": jnp.ones((patch_dim,), jnp.float32),
        "head_ln_b": jnp.zeros((patch_dim,), jnp.float32),
        "head_w": nrm((patch_dim, num_classes), 0.02),
        "head_b": jnp.zeros((num_classes,), jnp.float32),
    }
    for _ in range(depth):
        params["layers"].append({
            "pix_attn": attn_block(pixel_dim),
            "pix_ff": ff_block(pixel_dim),
            "p2p_ln_g": jnp.ones((pixel_dim,), jnp.float32),
            "p2p_ln_b": jnp.zeros((pixel_dim,), jnp.float32),
            "p2p_w": nrm((pixel_dim * num_pixels, patch_dim), 0.02),
            "p2p_b": jnp.zeros((patch_dim,), jnp.float32),
            "patch_attn": attn_block(patch_dim),
            "patch_ff": ff_block(patch_dim),
        })
    return params


# ----------------------------------- main -----------------------------------

if __name__ == "__main__":
    # NOTE: pixel_width (= patch_size // pixel_size) must equal pixel_size for the
    # pixel positional-embedding broadcast in the reference module to be valid.
    cfg = dict(image_size=8, patch_dim=32, pixel_dim=16, patch_size=4,
               pixel_size=2, depth=2, num_classes=10, heads=2, dim_head=8)

    key = jax.random.PRNGKey(0)
    pkey, xkey = jax.random.split(key)
    params = init_params(pkey, cfg)
    x = jax.random.normal(xkey, (2, 3, cfg["image_size"], cfg["image_size"]),
                          jnp.float32)

    fwd = jax.jit(lambda xx, pp: tnt_forward(xx, pp, cfg))
    logits = fwd(x, params)
    jax.block_until_ready(logits)

    assert logits.shape == (2, cfg["num_classes"]), logits.shape
    assert bool(jnp.all(jnp.isfinite(logits)))
    print("KERNEL_OK")
</pallas_src>

<mosaic_0001>
module attributes {stable_mosaic.version = 11 : i64} {
  func.func @_attn_block_kernel(%arg0: i32, %arg1: memref<1x4x16xf32, #tpu.memory_space<vmem>>, %arg2: memref<1x16xf32, #tpu.memory_space<vmem>>, %arg3: memref<1x16xf32, #tpu.memory_space<vmem>>, %arg4: memref<16x48xbf16, #tpu.memory_space<vmem>>, %arg5: memref<16x16xbf16, #tpu.memory_space<vmem>>, %arg6: memref<1x16xf32, #tpu.memory_space<vmem>>, %arg7: memref<1x4x16xf32, #tpu.memory_space<vmem>>) attributes {dimension_semantics = [#tpu.dimension_semantics<parallel>], iteration_bounds = array<i64: 8>, scalar_prefetch = 0 : i64, scratch_operands = 0 : i64, tpu.core_type = #tpu.core_type<tc>, window_params = [{transform_indices = @transform_0, window_bounds = array<i64: 1, 4, 16>}, {pipeline_mode = #tpu.pipeline_mode<synchronous>, transform_indices = @transform_1, window_bounds = array<i64: 1, 16>}, {pipeline_mode = #tpu.pipeline_mode<synchronous>, transform_indices = @transform_2, window_bounds = array<i64: 1, 16>}, {pipeline_mode = #tpu.pipeline_mode<synchronous>, transform_indices = @transform_3, window_bounds = array<i64: 16, 48>}, {pipeline_mode = #tpu.pipeline_mode<synchronous>, transform_indices = @transform_4, window_bounds = array<i64: 16, 16>}, {pipeline_mode = #tpu.pipeline_mode<synchronous>, transform_indices = @transform_5, window_bounds = array<i64: 1, 16>}, {transform_indices = @transform_6, window_bounds = array<i64: 1, 4, 16>}]} {
    %c0 = arith.constant 0 : index
    %c0_0 = arith.constant 0 : index
    %c0_1 = arith.constant 0 : index
    %0 = vector.load %arg1[%c0, %c0_0, %c0_1] : memref<1x4x16xf32, #tpu.memory_space<vmem>>, vector<1x4x16xf32>
    %1 = vector.shape_cast %0 : vector<1x4x16xf32> to vector<4x16xf32>
    %cst = arith.constant dense<0.000000e+00> : vector<4xf32>
    %2 = vector.multi_reduction <add>, %1, %cst [1] : vector<4x16xf32> to vector<4xf32>
    %3 = vector.shape_cast %2 : vector<4xf32> to vector<4x1xf32>
    %cst_2 = arith.constant 1.600000e+01 : f32
    %4 = vector.broadcast %cst_2 : f32 to vector<4x1xf32>
    %5 = arith.divf %3, %4 : vector<4x1xf32>
    %6 = vector.broadcast %5 : vector<4x1xf32> to vector<4x16xf32>
    %7 = arith.subf %1, %6 : vector<4x16xf32>
    %8 = arith.mulf %7, %7 : vector<4x16xf32>
    %cst_3 = arith.constant dense<0.000000e+00> : vector<4xf32>
    %9 = vector.multi_reduction <add>, %8, %cst_3 [1] : vector<4x16xf32> to vector<4xf32>
    %10 = vector.shape_cast %9 : vector<4xf32> to vector<4x1xf32>
    %cst_4 = arith.constant 1.600000e+01 : f32
    %11 = vector.broadcast %cst_4 : f32 to vector<4x1xf32>
    %12 = arith.divf %10, %11 : vector<4x1xf32>
    %13 = vector.broadcast %5 : vector<4x1xf32> to vector<4x16xf32>
    %14 = arith.subf %1, %13 : vector<4x16xf32>
    %cst_5 = arith.constant 9.99999974E-6 : f32
    %15 = vector.broadcast %cst_5 : f32 to vector<4x1xf32>
    %16 = arith.addf %12, %15 : vector<4x1xf32>
    %17 = math.rsqrt %16 : vector<4x1xf32>
    %18 = vector.broadcast %17 : vector<4x1xf32> to vector<4x16xf32>
    %19 = arith.mulf %14, %18 : vector<4x16xf32>
    %c0_6 = arith.constant 0 : index
    %c0_7 = arith.constant 0 : index
    %20 = vector.load %arg2[%c0_6, %c0_7] : memref<1x16xf32, #tpu.memory_space<vmem>>, vector<1x16xf32>
    %21 = vector.broadcast %20 : vector<1x16xf32> to vector<4x16xf32>
    %22 = arith.mulf %19, %21 : vector<4x16xf32>
    %c0_8 = arith.constant 0 : index
    %c0_9 = arith.constant 0 : index
    %23 = vector.load %arg3[%c0_8, %c0_9] : memref<1x16xf32, #tpu.memory_space<vmem>>, vector<1x16xf32>
    %24 = vector.broadcast %23 : vector<1x16xf32> to vector<4x16xf32>
    %25 = arith.addf %22, %24 : vector<4x16xf32>
    %26 = arith.truncf %25 : vector<4x16xf32> to vector<4x16xbf16>
    %c0_10 = arith.constant 0 : index
    %c0_11 = arith.constant 0 : index
    %27 = vector.load %arg4[%c0_10, %c0_11] : memref<16x48xbf16, #tpu.memory_space<vmem>>, vector<16x48xbf16>
    %cst_12 = arith.constant dense<0.000000e+00> : vector<4x48xf32>
    %28 = tpu.matmul %26, %27, %cst_12 {dimension_numbers = #tpu.dot_dimension_numbers<[1], [0], [0], [1], [0, 0, 1, 1], [], []>} : vector<4x16xbf16>, vector<16x48xbf16>, vector<4x48xf32> -> vector<4x48xf32>
    %29 = vector.extract_strided_slice %28 {offsets = [0, 0], sizes = [4, 8], strides = [1, 1]} : vector<4x48xf32> to vector<4x8xf32>
    %30 = arith.truncf %29 : vector<4x8xf32> to vector<4x8xbf16>
    %31 = vector.extract_strided_slice %28 {offsets = [0, 16], sizes = [4, 8], strides = [1, 1]} : vector<4x48xf32> to vector<4x8xf32>
    %32 = arith.truncf %31 : vector<4x8xf32> to vector<4x8xbf16>
    %33 = vector.extract_strided_slice %28 {offsets = [0, 32], sizes = [4, 8], strides = [1, 1]} : vector<4x48xf32> to vector<4x8xf32>
    %34 = arith.truncf %33 : vector<4x8xf32> to vector<4x8xbf16>
    %cst_13 = arith.constant dense<0.000000e+00> : vector<4x4xf32>
    %35 = tpu.matmul %30, %32, %cst_13 {dimension_numbers = #tpu.dot_dimension_numbers<[1], [1], [0], [0], [0, 0, 1, 0], [], []>} : vector<4x8xbf16>, vector<4x8xbf16>, vector<4x4xf32> -> vector<4x4xf32>
    %cst_14 = arith.constant 0.353553385 : f32
    %36 = vector.broadcast %cst_14 : f32 to vector<4x4xf32>
    %37 = arith.mulf %35, %36 : vector<4x4xf32>
    %cst_15 = arith.constant dense<0xFF800000> : vector<4xf32>
    %38 = vector.multi_reduction <maximumf>, %37, %cst_15 [1] : vector<4x4xf32> to vector<4xf32>
    %39 = vector.shape_cast %38 : vector<4xf32> to vector<4x1xf32>
    %40 = vector.broadcast %39 : vector<4x1xf32> to vector<4x4xf32>
    %41 = arith.subf %37, %40 : vector<4x4xf32>
    %42 = math.exp %41 : vector<4x4xf32>
    %cst_16 = arith.constant dense<0.000000e+00> : vector<4xf32>
    %43 = vector.multi_reduction <add>, %42, %cst_16 [1] : vector<4x4xf32> to vector<4xf32>
    %44 = vector.shape_cast %43 : vector<4xf32> to vector<4x1xf32>
    %45 = tpu.reciprocal %44 {approx = true} : vector<4x1xf32> -> vector<4x1xf32>
    %46 = vector.broadcast %45 : vector<4x1xf32> to vector<4x4xf32>
    %47 = arith.mulf %42, %46 : vector<4x4xf32>
    %48 = arith.truncf %47 : vector<4x4xf32> to vector<4x4xbf16>
    %cst_17 = arith.constant dense<0.000000e+00> : vector<4x8xf32>
    %49 = tpu.matmul %48, %34, %cst_17 {dimension_numbers = #tpu.dot_dimension_numbers<[1], [0], [0], [1], [0, 0, 1, 1], [], []>} : vector<4x4xbf16>, vector<4x8xbf16>, vector<4x8xf32> -> vector<4x8xf32>
    %50 = vector.extract_strided_slice %28 {offsets = [0, 8], sizes = [4, 8], strides = [1, 1]} : vector<4x48xf32> to vector<4x8xf32>
    %51 = arith.truncf %50 : vector<4x8xf32> to vector<4x8xbf16>
    %52 = vector.extract_strided_slice %28 {offsets = [0, 24], sizes = [4, 8], strides = [1, 1]} : vector<4x48xf32> to vector<4x8xf32>
    %53 = arith.truncf %52 : vector<4x8xf32> to vector<4x8xbf16>
    %54 = vector.extract_strided_slice %28 {offsets = [0, 40], sizes = [4, 8], strides = [1, 1]} : vector<4x48xf32> to vector<4x8xf32>
    %55 = arith.truncf %54 : vector<4x8xf32> to vector<4x8xbf16>
    %cst_18 = arith.constant dense<0.000000e+00> : vector<4x4xf32>
    %56 = tpu.matmul %51, %53, %cst_18 {dimension_numbers = #tpu.dot_dimension_numbers<[1], [1], [0], [0], [0, 0, 1, 0], [], []>} : vector<4x8xbf16>, vector<4x8xbf16>, vector<4x4xf32> -> vector<4x4xf32>
    %cst_19 = arith.constant 0.353553385 : f32
    %57 = vector.broadcast %cst_19 : f32 to vector<4x4xf32>
    %58 = arith.mulf %56, %57 : vector<4x4xf32>
    %cst_20 = arith.constant dense<0xFF800000> : vector<4xf32>
    %59 = vector.multi_reduction <maximumf>, %58, %cst_20 [1] : vector<4x4xf32> to vector<4xf32>
    %60 = vector.shape_cast %59 : vector<4xf32> to vector<4x1xf32>
    %61 = vector.broadcast %60 : vector<4x1xf32> to vector<4x4xf32>
    %62 = arith.subf %58, %61 : vector<4x4xf32>
    %63 = math.exp %62 : vector<4x4xf32>
    %cst_21 = arith.constant dense<0.000000e+00> : vector<4xf32>
    %64 = vector.multi_reduction <add>, %63, %cst_21 [1] : vector<4x4xf32> to vector<4xf32>
    %65 = vector.shape_cast %64 : vector<4xf32> to vector<4x1xf32>
    %66 = tpu.reciprocal %65 {approx = true} : vector<4x1xf32> -> vector<4x1xf32>
    %67 = vector.broadcast %66 : vector<4x1xf32> to vector<4x4xf32>
    %68 = arith.mulf %63, %67 : vector<4x4xf32>
    %69 = arith.truncf %68 : vector<4x4xf32> to vector<4x4xbf16>
    %cst_22 = arith.constant dense<0.000000e+00> : vector<4x8xf32>
    %70 = tpu.matmul %69, %55, %cst_22 {dimension_numbers = #tpu.dot_dimension_numbers<[1], [0], [0], [1], [0, 0, 1, 1], [], []>} : vector<4x4xbf16>, vector<4x8xbf16>, vector<4x8xf32> -> vector<4x8xf32>
    %71 = tpu.concatenate %49, %70 in 1 : vector<4x8xf32>, vector<4x8xf32> -> vector<4x16xf32>
    %72 = arith.truncf %71 : vector<4x16xf32> to vector<4x16xbf16>
    %c0_23 = arith.constant 0 : index
    %c0_24 = arith.constant 0 : index
    %73 = vector.load %arg5[%c0_23, %c0_24] : memref<16x16xbf16, #tpu.memory_space<vmem>>, vector<16x16xbf16>
    %cst_25 = arith.constant dense<0.000000e+00> : vector<4x16xf32>
    %74 = tpu.matmul %72, %73, %cst_25 {dimension_numbers = #tpu.dot_dimension_numbers<[1], [0], [0], [1], [0, 0, 1, 1], [], []>} : vector<4x16xbf16>, vector<16x16xbf16>, vector<4x16xf32> -> vector<4x16xf32>
    %c0_26 = arith.constant 0 : index
    %c0_27 = arith.constant 0 : index
    %75 = vector.load %arg6[%c0_26, %c0_27] : memref<1x16xf32, #tpu.memory_space<vmem>>, vector<1x16xf32>
    %76 = vector.broadcast %75 : vector<1x16xf32> to vector<4x16xf32>
    %77 = arith.addf %74, %76 : vector<4x16xf32>
    %78 = arith.addf %1, %77 : vector<4x16xf32>
    %c0_28 = arith.constant 0 : index
    %c0_29 = arith.constant 0 : index
    %c0_30 = arith.constant 0 : index
    %79 = vector.load %arg7[%c0_28, %c0_29, %c0_30] : memref<1x4x16xf32, #tpu.memory_space<vmem>>, vector<1x4x16xf32>
    %80 = vector.shape_cast %79 : vector<1x4x16xf32> to vector<4x16xf32>
    %81 = vector.shape_cast %78 : vector<4x16xf32> to vector<1x4x16xf32>
    tpu.vector_store %arg7[%c0_28, %c0_29, %c0_30], %81 {strides = array<i32>} : memref<1x4x16xf32, #tpu.memory_space<vmem>>, vector<1x4x16xf32>,
    return
  }
  func.func @transform_0(%arg0: i32) -> (i32, i32, i32) {
    %c0_i32 = arith.constant 0 : i32
    %c0_i32_0 = arith.constant 0 : i32
    %c0_i32_1 = arith.constant 0 : i32
    return %arg0, %c0_i32, %c0_i32_0 : i32, i32, i32
  }
  func.func @transform_1(%arg0: i32) -> (i32, i32) {
    %c0_i32 = arith.constant 0 : i32
    %c0_i32_0 = arith.constant 0 : i32
    %c0_i32_1 = arith.constant 0 : i32
    return %c0_i32, %c0_i32_0 : i32, i32
  }
  func.func @transform_2(%arg0: i32) -> (i32, i32) {
    %c0_i32 = arith.constant 0 : i32
    %c0_i32_0 = arith.constant 0 : i32
    %c0_i32_1 = arith.constant 0 : i32
    return %c0_i32, %c0_i32_0 : i32, i32
  }
  func.func @transform_3(%arg0: i32) -> (i32, i32) {
    %c0_i32 = arith.constant 0 : i32
    %c0_i32_0 = arith.constant 0 : i32
    %c0_i32_1 = arith.constant 0 : i32
    return %c0_i32, %c0_i32_0 : i32, i32
  }
  func.func @transform_4(%arg0: i32) -> (i32, i32) {
    %c0_i32 = arith.constant 0 : i32
    %c0_i32_0 = arith.constant 0 : i32
    %c0_i32_1 = arith.constant 0 : i32
    return %c0_i32, %c0_i32_0 : i32, i32
  }
  func.func @transform_5(%arg0: i32) -> (i32, i32) {
    %c0_i32 = arith.constant 0 : i32
    %c0_i32_0 = arith.constant 0 : i32
    %c0_i32_1 = arith.constant 0 : i32
    return %c0_i32, %c0_i32_0 : i32, i32
  }
  func.func @transform_6(%arg0: i32) -> (i32, i32, i32) {
    %c0_i32 = arith.constant 0 : i32
    %c0_i32_0 = arith.constant 0 : i32
    %c0_i32_1 = arith.constant 0 : i32
    return %arg0, %c0_i32, %c0_i32_0 : i32, i32, i32
  }
}

module attributes {stable_mosaic.version = 11 : i64} {
  func.func @_ln_linear_kernel(%arg0: i32, %arg1: memref<32x12xf32, #tpu.memory_space<vmem>>, %arg2: memref<12x16xbf16, #tpu.memory_space<vmem>>, %arg3: memref<1x16xf32, #tpu.memory_space<vmem>>, %arg4: memref<32x16xf32, #tpu.memory_space<vmem>>) attributes {dimension_semantics = [#tpu.dimension_semantics<parallel>], iteration_bounds = array<i64: 1>, scalar_prefetch = 0 : i64, scratch_operands = 0 : i64, tpu.core_type = #tpu.core_type<tc>, window_params = [{transform_indices = @transform_0, window_bounds = array<i64: 32, 12>}, {pipeline_mode = #tpu.pipeline_mode<synchronous>, transform_indices = @transform_1, window_bounds = array<i64: 12, 16>}, {pipeline_mode = #tpu.pipeline_mode<synchronous>, transform_indices = @transform_2, window_bounds = array<i64: 1, 16>}, {transform_indices = @transform_3, window_bounds = array<i64: 32, 16>}]} {
    %c0 = arith.constant 0 : index
    %c0_0 = arith.constant 0 : index
    %0 = vector.load %arg1[%c0, %c0_0] : memref<32x12xf32, #tpu.memory_space<vmem>>, vector<32x12xf32>
    %1 = arith.truncf %0 : vector<32x12xf32> to vector<32x12xbf16>
    %c0_1 = arith.constant 0 : index
    %c0_2 = arith.constant 0 : index
    %2 = vector.load %arg2[%c0_1, %c0_2] : memref<12x16xbf16, #tpu.memory_space<vmem>>, vector<12x16xbf16>
    %cst = arith.constant dense<0.000000e+00> : vector<32x16xf32>
    %3 = tpu.matmul %1, %2, %cst {dimension_numbers = #tpu.dot_dimension_numbers<[1], [0], [0], [1], [0, 0, 1, 1], [], []>} : vector<32x12xbf16>, vector<12x16xbf16>, vector<32x16xf32> -> vector<32x16xf32>
    %c0_3 = arith.constant 0 : index
    %c0_4 = arith.constant 0 : index
    %4 = vector.load %arg3[%c0_3, %c0_4] : memref<1x16xf32, #tpu.memory_space<vmem>>, vector<1x16xf32>
    %5 = vector.broadcast %4 : vector<1x16xf32> to vector<32x16xf32>
    %6 = arith.addf %3, %5 : vector<32x16xf32>
    %c0_5 = arith.constant 0 : index
    %c0_6 = arith.constant 0 : index
    %7 = vector.load %arg4[%c0_5, %c0_6] : memref<32x16xf32, #tpu.memory_space<vmem>>, vector<32x16xf32>
    tpu.vector_store %arg4[%c0_5, %c0_6], %6 {strides = array<i32>} : memref<32x16xf32, #tpu.memory_space<vmem>>, vector<32x16xf32>,
    return
  }
  func.func @transform_0(%arg0: i32) -> (i32, i32) {
    %c0_i32 = arith.constant 0 : i32
    %c0_i32_0 = arith.constant 0 : i32
    return %arg0, %c0_i32 : i32, i32
  }
  func.func @transform_1(%arg0: i32) -> (i32, i32) {
    %c0_i32 = arith.constant 0 : i32
    %c0_i32_0 = arith.constant 0 : i32
    %c0_i32_1 = arith.constant 0 : i32
    return %c0_i32, %c0_i32_0 : i32, i32
  }
  func.func @transform_2(%arg0: i32) -> (i32, i32) {
    %c0_i32 = arith.constant 0 : i32
    %c0_i32_0 = arith.constant 0 : i32
    %c0_i32_1 = arith.constant 0 : i32
    return %c0_i32, %c0_i32_0 : i32, i32
  }
  func.func @transform_3(%arg0: i32) -> (i32, i32) {
    %c0_i32 = arith.constant 0 : i32
    %c0_i32_0 = arith.constant 0 : i32
    return %arg0, %c0_i32 : i32, i32
  }
}

module attributes {stable_mosaic.version = 11 : i64} {
  func.func @_p2p_kernel(%arg0: i32, %arg1: memref<8x4x16xf32, #tpu.memory_space<vmem>>, %arg2: memref<1x1x16xf32, #tpu.memory_space<vmem>>, %arg3: memref<1x1x16xf32, #tpu.memory_space<vmem>>, %arg4: memref<4x16x32xbf16, #tpu.memory_space<vmem>>, %arg5: memref<1x32xf32, #tpu.memory_space<vmem>>, %arg6: memref<8x32xf32, #tpu.memory_space<vmem>>) attributes {dimension_semantics = [#tpu.dimension_semantics<parallel>], iteration_bounds = array<i64: 1>, scalar_prefetch = 0 : i64, scratch_operands = 0 : i64, tpu.core_type = #tpu.core_type<tc>, window_params = [{transform_indices = @transform_0, window_bounds = array<i64: 8, 4, 16>}, {pipeline_mode = #tpu.pipeline_mode<synchronous>, transform_indices = @transform_1, window_bounds = array<i64: 1, 1, 16>}, {pipeline_mode = #tpu.pipeline_mode<synchronous>, transform_indices = @transform_2, window_bounds = array<i64: 1, 1, 16>}, {pipeline_mode = #tpu.pipeline_mode<synchronous>, transform_indices = @transform_3, window_bounds = array<i64: 4, 16, 32>}, {pipeline_mode = #tpu.pipeline_mode<synchronous>, transform_indices = @transform_4, window_bounds = array<i64: 1, 32>}, {transform_indices = @transform_5, window_bounds = array<i64: 8, 32>}]} {
    %c0 = arith.constant 0 : index
    %c0_0 = arith.constant 0 : index
    %c0_1 = arith.constant 0 : index
    %0 = vector.load %arg1[%c0, %c0_0, %c0_1] : memref<8x4x16xf32, #tpu.memory_space<vmem>>, vector<8x4x16xf32>
    %cst = arith.constant dense<0.000000e+00> : vector<8x4xf32>
    %1 = vector.multi_reduction <add>, %0, %cst [2] : vector<8x4x16xf32> to vector<8x4xf32>
    %2 = vector.shape_cast %1 : vector<8x4xf32> to vector<8x4x1xf32>
    %cst_2 = arith.constant 1.600000e+01 : f32
    %3 = vector.broadcast %cst_2 : f32 to vector<8x4x1xf32>
    %4 = arith.divf %2, %3 : vector<8x4x1xf32>
    %5 = vector.broadcast %4 : vector<8x4x1xf32> to vector<8x4x16xf32>
    %6 = arith.subf %0, %5 : vector<8x4x16xf32>
    %7 = arith.mulf %6, %6 : vector<8x4x16xf32>
    %cst_3 = arith.constant dense<0.000000e+00> : vector<8x4xf32>
    %8 = vector.multi_reduction <add>, %7, %cst_3 [2] : vector<8x4x16xf32> to vector<8x4xf32>
    %9 = vector.shape_cast %8 : vector<8x4xf32> to vector<8x4x1xf32>
    %cst_4 = arith.constant 1.600000e+01 : f32
    %10 = vector.broadcast %cst_4 : f32 to vector<8x4x1xf32>
    %11 = arith.divf %9, %10 : vector<8x4x1xf32>
    %12 = vector.broadcast %4 : vector<8x4x1xf32> to vector<8x4x16xf32>
    %13 = arith.subf %0, %12 : vector<8x4x16xf32>
    %cst_5 = arith.constant 9.99999974E-6 : f32
    %14 = vector.broadcast %cst_5 : f32 to vector<8x4x1xf32>
    %15 = arith.addf %11, %14 : vector<8x4x1xf32>
    %16 = math.rsqrt %15 : vector<8x4x1xf32>
    %17 = vector.broadcast %16 : vector<8x4x1xf32> to vector<8x4x16xf32>
    %18 = arith.mulf %13, %17 : vector<8x4x16xf32>
    %c0_6 = arith.constant 0 : index
    %c0_7 = arith.constant 0 : index
    %c0_8 = arith.constant 0 : index
    %19 = vector.load %arg2[%c0_6, %c0_7, %c0_8] : memref<1x1x16xf32, #tpu.memory_space<vmem>>, vector<1x1x16xf32>
    %20 = vector.broadcast %19 : vector<1x1x16xf32> to vector<8x4x16xf32>
    %21 = arith.mulf %18, %20 : vector<8x4x16xf32>
    %c0_9 = arith.constant 0 : index
    %c0_10 = arith.constant 0 : index
    %c0_11 = arith.constant 0 : index
    %22 = vector.load %arg3[%c0_9, %c0_10, %c0_11] : memref<1x1x16xf32, #tpu.memory_space<vmem>>, vector<1x1x16xf32>
    %23 = vector.broadcast %22 : vector<1x1x16xf32> to vector<8x4x16xf32>
    %24 = arith.addf %21, %23 : vector<8x4x16xf32>
    %25 = arith.truncf %24 : vector<8x4x16xf32> to vector<8x4x16xbf16>
    %cst_12 = arith.constant 0.000000e+00 : f32
    %26 = vector.broadcast %cst_12 : f32 to vector<8x32xf32>
    %27 = vector.extract_strided_slice %25 {offsets = [0, 0, 0], sizes = [8, 1, 16], strides = [1, 1, 1]} : vector<8x4x16xbf16> to vector<8x1x16xbf16>
    %28 = vector.shape_cast %27 : vector<8x1x16xbf16> to vector<8x16xbf16>
    %c0_13 = arith.constant 0 : index
    %c0_14 = arith.constant 0 : index
    %c0_15 = arith.constant 0 : index
    %29 = vector.load %arg4[%c0_13, %c0_14, %c0_15] : memref<4x16x32xbf16, #tpu.memory_space<vmem>>, vector<1x16x32xbf16>
    %30 = vector.shape_cast %29 : vector<1x16x32xbf16> to vector<16x32xbf16>
    %cst_16 = arith.constant dense<0.000000e+00> : vector<8x32xf32>
    %31 = tpu.matmul %28, %30, %cst_16 {dimension_numbers = #tpu.dot_dimension_numbers<[1], [0], [0], [1], [0, 0, 1, 1], [], []>} : vector<8x16xbf16>, vector<16x32xbf16>, vector<8x32xf32> -> vector<8x32xf32>
    %32 = arith.addf %26, %31 : vector<8x32xf32>
    %33 = vector.extract_strided_slice %25 {offsets = [0, 1, 0], sizes = [8, 1, 16], strides = [1, 1, 1]} : vector<8x4x16xbf16> to vector<8x1x16xbf16>
    %34 = vector.shape_cast %33 : vector<8x1x16xbf16> to vector<8x16xbf16>
    %c1 = arith.constant 1 : index
    %c0_17 = arith.constant 0 : index
    %c0_18 = arith.constant 0 : index
    %35 = vector.load %arg4[%c1, %c0_17, %c0_18] : memref<4x16x32xbf16, #tpu.memory_space<vmem>>, vector<1x16x32xbf16>
    %36 = vector.shape_cast %35 : vector<1x16x32xbf16> to vector<16x32xbf16>
    %cst_19 = arith.constant dense<0.000000e+00> : vector<8x32xf32>
    %37 = tpu.matmul %34, %36, %cst_19 {dimension_numbers = #tpu.dot_dimension_numbers<[1], [0], [0], [1], [0, 0, 1, 1], [], []>} : vector<8x16xbf16>, vector<16x32xbf16>, vector<8x32xf32> -> vector<8x32xf32>
    %38 = arith.addf %32, %37 : vector<8x32xf32>
    %39 = vector.extract_strided_slice %25 {offsets = [0, 2, 0], sizes = [8, 1, 16], strides = [1, 1, 1]} : vector<8x4x16xbf16> to vector<8x1x16xbf16>
    %40 = vector.shape_cast %39 : vector<8x1x16xbf16> to vector<8x16xbf16>
    %c2 = arith.constant 2 : index
    %c0_20 = arith.constant 0 : index
    %c0_21 = arith.constant 0 : index
    %41 = vector.load %arg4[%c2, %c0_20, %c0_21] : memref<4x16x32xbf16, #tpu.memory_space<vmem>>, vector<1x16x32xbf16>
    %42 = vector.shape_cast %41 : vector<1x16x32xbf16> to vector<16x32xbf16>
    %cst_22 = arith.constant dense<0.000000e+00> : vector<8x32xf32>
    %43 = tpu.matmul %40, %42, %cst_22 {dimension_numbers = #tpu.dot_dimension_numbers<[1], [0], [0], [1], [0, 0, 1, 1], [], []>} : vector<8x16xbf16>, vector<16x32xbf16>, vector<8x32xf32> -> vector<8x32xf32>
    %44 = arith.addf %38, %43 : vector<8x32xf32>
    %45 = vector.extract_strided_slice %25 {offsets = [0, 3, 0], sizes = [8, 1, 16], strides = [1, 1, 1]} : vector<8x4x16xbf16> to vector<8x1x16xbf16>
    %46 = vector.shape_cast %45 : vector<8x1x16xbf16> to vector<8x16xbf16>
    %c3 = arith.constant 3 : index
    %c0_23 = arith.constant 0 : index
    %c0_24 = arith.constant 0 : index
    %47 = vector.load %arg4[%c3, %c0_23, %c0_24] : memref<4x16x32xbf16, #tpu.memory_space<vmem>>, vector<1x16x32xbf16>
    %48 = vector.shape_cast %47 : vector<1x16x32xbf16> to vector<16x32xbf16>
    %cst_25 = arith.constant dense<0.000000e+00> : vector<8x32xf32>
    %49 = tpu.matmul %46, %48, %cst_25 {dimension_numbers = #tpu.dot_dimension_numbers<[1], [0], [0], [1], [0, 0, 1, 1], [], []>} : vector<8x16xbf16>, vector<16x32xbf16>, vector<8x32xf32> -> vector<8x32xf32>
    %50 = arith.addf %44, %49 : vector<8x32xf32>
    %c0_26 = arith.constant 0 : index
    %c0_27 = arith.constant 0 : index
    %51 = vector.load %arg5[%c0_26, %c0_27] : memref<1x32xf32, #tpu.memory_space<vmem>>, vector<1x32xf32>
    %52 = vector.broadcast %51 : vector<1x32xf32> to vector<8x32xf32>
    %53 = arith.addf %50, %52 : vector<8x32xf32>
    %c0_28 = arith.constant 0 : index
    %c0_29 = arith.constant 0 : index
    %54 = vector.load %arg6[%c0_28, %c0_29] : memref<8x32xf32, #tpu.memory_space<vmem>>, vector<8x32xf32>
    tpu.vector_store %arg6[%c0_28, %c0_29], %53 {strides = array<i32>} : memref<8x32xf32, #tpu.memory_space<vmem>>, vector<8x32xf32>,
    return
  }
  func.func @transform_0(%arg0: i32) -> (i32, i32, i32) {
    %c0_i32 = arith.constant 0 : i32
    %c0_i32_0 = arith.constant 0 : i32
    %c0_i32_1 = arith.constant 0 : i32
    return %arg0, %c0_i32, %c0_i32_0 : i32, i32, i32
  }
  func.func @transform_1(%arg0: i32) -> (i32, i32, i32) {
    %c0_i32 = arith.constant 0 : i32
    %c0_i32_0 = arith.constant 0 : i32
    %c0_i32_1 = arith.constant 0 : i32
    %c0_i32_2 = arith.constant 0 : i32
    return %c0_i32, %c0_i32_0, %c0_i32_1 : i32, i32, i32
  }
  func.func @transform_2(%arg0: i32) -> (i32, i32, i32) {
    %c0_i32 = arith.constant 0 : i32
    %c0_i32_0 = arith.constant 0 : i32
    %c0_i32_1 = arith.constant 0 : i32
    %c0_i32_2 = arith.constant 0 : i32
    return %c0_i32, %c0_i32_0, %c0_i32_1 : i32, i32, i32
  }
  func.func @transform_3(%arg0: i32) -> (i32, i32, i32) {
    %c0_i32 = arith.constant 0 : i32
    %c0_i32_0 = arith.constant 0 : i32
    %c0_i32_1 = arith.constant 0 : i32
    %c0_i32_2 = arith.constant 0 : i32
    return %c0_i32, %c0_i32_0, %c0_i32_1 : i32, i32, i32
  }
  func.func @transform_4(%arg0: i32) -> (i32, i32) {
    %c0_i32 = arith.constant 0 : i32
    %c0_i32_0 = arith.constant 0 : i32
    %c0_i32_1 = arith.constant 0 : i32
    return %c0_i32, %c0_i32_0 : i32, i32
  }
  func.func @transform_5(%arg0: i32) -> (i32, i32) {
    %c0_i32 = arith.constant 0 : i32
    %c0_i32_0 = arith.constant 0 : i32
    return %arg0, %c0_i32 : i32, i32
  }
}

module attributes {stable_mosaic.version = 11 : i64} {
  func.func @_ff_kernel(%arg0: i32, %arg1: memref<32x16xf32, #tpu.memory_space<vmem>>, %arg2: memref<1x16xf32, #tpu.memory_space<vmem>>, %arg3: memref<1x16xf32, #tpu.memory_space<vmem>>, %arg4: memref<16x64xbf16, #tpu.memory_space<vmem>>, %arg5: memref<1x64xf32, #tpu.memory_space<vmem>>, %arg6: memref<64x16xbf16, #tpu.memory_space<vmem>>, %arg7: memref<1x16xf32, #tpu.memory_space<vmem>>, %arg8: memref<32x16xf32, #tpu.memory_space<vmem>>) attributes {dimension_semantics = [#tpu.dimension_semantics<parallel>], iteration_bounds = array<i64: 1>, scalar_prefetch = 0 : i64, scratch_operands = 0 : i64, tpu.core_type = #tpu.core_type<tc>, window_params = [{transform_indices = @transform_0, window_bounds = array<i64: 32, 16>}, {pipeline_mode = #tpu.pipeline_mode<synchronous>, transform_indices = @transform_1, window_bounds = array<i64: 1, 16>}, {pipeline_mode = #tpu.pipeline_mode<synchronous>, transform_indices = @transform_2, window_bounds = array<i64: 1, 16>}, {pipeline_mode = #tpu.pipeline_mode<synchronous>, transform_indices = @transform_3, window_bounds = array<i64: 16, 64>}, {pipeline_mode = #tpu.pipeline_mode<synchronous>, transform_indices = @transform_4, window_bounds = array<i64: 1, 64>}, {pipeline_mode = #tpu.pipeline_mode<synchronous>, transform_indices = @transform_5, window_bounds = array<i64: 64, 16>}, {pipeline_mode = #tpu.pipeline_mode<synchronous>, transform_indices = @transform_6, window_bounds = array<i64: 1, 16>}, {transform_indices = @transform_7, window_bounds = array<i64: 32, 16>}]} {
    %c0 = arith.constant 0 : index
    %c0_0 = arith.constant 0 : index
    %0 = vector.load %arg1[%c0, %c0_0] : memref<32x16xf32, #tpu.memory_space<vmem>>, vector<32x16xf32>
    %cst = arith.constant dense<0.000000e+00> : vector<32xf32>
    %1 = vector.multi_reduction <add>, %0, %cst [1] : vector<32x16xf32> to vector<32xf32>
    %2 = vector.shape_cast %1 : vector<32xf32> to vector<32x1xf32>
    %cst_1 = arith.constant 1.600000e+01 : f32
    %3 = vector.broadcast %cst_1 : f32 to vector<32x1xf32>
    %4 = arith.divf %2, %3 : vector<32x1xf32>
    %5 = vector.broadcast %4 : vector<32x1xf32> to vector<32x16xf32>
    %6 = arith.subf %0, %5 : vector<32x16xf32>
    %7 = arith.mulf %6, %6 : vector<32x16xf32>
    %cst_2 = arith.constant dense<0.000000e+00> : vector<32xf32>
    %8 = vector.multi_reduction <add>, %7, %cst_2 [1] : vector<32x16xf32> to vector<32xf32>
    %9 = vector.shape_cast %8 : vector<32xf32> to vector<32x1xf32>
    %cst_3 = arith.constant 1.600000e+01 : f32
    %10 = vector.broadcast %cst_3 : f32 to vector<32x1xf32>
    %11 = arith.divf %9, %10 : vector<32x1xf32>
    %12 = vector.broadcast %4 : vector<32x1xf32> to vector<32x16xf32>
    %13 = arith.subf %0, %12 : vector<32x16xf32>
    %cst_4 = arith.constant 9.99999974E-6 : f32
    %14 = vector.broadcast %cst_4 : f32 to vector<32x1xf32>
    %15 = arith.addf %11, %14 : vector<32x1xf32>
    %16 = math.rsqrt %15 : vector<32x1xf32>
    %17 = vector.broadcast %16 : vector<32x1xf32> to vector<32x16xf32>
    %18 = arith.mulf %13, %17 : vector<32x16xf32>
    %c0_5 = arith.constant 0 : index
    %c0_6 = arith.constant 0 : index
    %19 = vector.load %arg2[%c0_5, %c0_6] : memref<1x16xf32, #tpu.memory_space<vmem>>, vector<1x16xf32>
    %20 = vector.broadcast %19 : vector<1x16xf32> to vector<32x16xf32>
    %21 = arith.mulf %18, %20 : vector<32x16xf32>
    %c0_7 = arith.constant 0 : index
    %c0_8 = arith.constant 0 : index
    %22 = vector.load %arg3[%c0_7, %c0_8] : memref<1x16xf32, #tpu.memory_space<vmem>>, vector<1x16xf32>
    %23 = vector.broadcast %22 : vector<1x16xf32> to vector<32x16xf32>
    %24 = arith.addf %21, %23 : vector<32x16xf32>
    %25 = arith.truncf %24 : vector<32x16xf32> to vector<32x16xbf16>
    %c0_9 = arith.constant 0 : index
    %c0_10 = arith.constant 0 : index
    %26 = vector.load %arg4[%c0_9, %c0_10] : memref<16x64xbf16, #tpu.memory_space<vmem>>, vector<16x64xbf16>
    %cst_11 = arith.constant dense<0.000000e+00> : vector<32x64xf32>
    %27 = tpu.matmul %25, %26, %cst_11 {dimension_numbers = #tpu.dot_dimension_numbers<[1], [0], [0], [1], [0, 0, 1, 1], [], []>} : vector<32x16xbf16>, vector<16x64xbf16>, vector<32x64xf32> -> vector<32x64xf32>
    %c0_12 = arith.constant 0 : index
    %c0_13 = arith.constant 0 : index
    %28 = vector.load %arg5[%c0_12, %c0_13] : memref<1x64xf32, #tpu.memory_space<vmem>>, vector<1x64xf32>
    %29 = vector.broadcast %28 : vector<1x64xf32> to vector<32x64xf32>
    %30 = arith.addf %27, %29 : vector<32x64xf32>
    %cst_14 = arith.constant 5.000000e-01 : f32
    %31 = vector.broadcast %cst_14 : f32 to vector<32x64xf32>
    %32 = arith.mulf %31, %30 : vector<32x64xf32>
    %cst_15 = arith.constant 0.707106769 : f32
    %33 = vector.broadcast %cst_15 : f32 to vector<32x64xf32>
    %34 = arith.mulf %30, %33 : vector<32x64xf32>
    %35 = math.erf %34 : vector<32x64xf32>
    %cst_16 = arith.constant 1.000000e+00 : f32
    %36 = vector.broadcast %cst_16 : f32 to vector<32x64xf32>
    %37 = arith.addf %36, %35 : vector<32x64xf32>
    %38 = arith.mulf %32, %37 : vector<32x64xf32>
    %39 = arith.truncf %38 : vector<32x64xf32> to vector<32x64xbf16>
    %c0_17 = arith.constant 0 : index
    %c0_18 = arith.constant 0 : index
    %40 = vector.load %arg6[%c0_17, %c0_18] : memref<64x16xbf16, #tpu.memory_space<vmem>>, vector<64x16xbf16>
    %cst_19 = arith.constant dense<0.000000e+00> : vector<32x16xf32>
    %41 = tpu.matmul %39, %40, %cst_19 {dimension_numbers = #tpu.dot_dimension_numbers<[1], [0], [0], [1], [0, 0, 1, 1], [], []>} : vector<32x64xbf16>, vector<64x16xbf16>, vector<32x16xf32> -> vector<32x16xf32>
    %c0_20 = arith.constant 0 : index
    %c0_21 = arith.constant 0 : index
    %42 = vector.load %arg7[%c0_20, %c0_21] : memref<1x16xf32, #tpu.memory_space<vmem>>, vector<1x16xf32>
    %43 = vector.broadcast %42 : vector<1x16xf32> to vector<32x16xf32>
    %44 = arith.addf %41, %43 : vector<32x16xf32>
    %45 = arith.addf %0, %44 : vector<32x16xf32>
    %c0_22 = arith.constant 0 : index
    %c0_23 = arith.constant 0 : index
    %46 = vector.load %arg8[%c0_22, %c0_23] : memref<32x16xf32, #tpu.memory_space<vmem>>, vector<32x16xf32>
    tpu.vector_store %arg8[%c0_22, %c0_23], %45 {strides = array<i32>} : memref<32x16xf32, #tpu.memory_space<vmem>>, vector<32x16xf32>,
    return
  }
  func.func @transform_0(%arg0: i32) -> (i32, i32) {
    %c0_i32 = arith.constant 0 : i32
    %c0_i32_0 = arith.constant 0 : i32
    return %arg0, %c0_i32 : i32, i32
  }
  func.func @transform_1(%arg0: i32) -> (i32, i32) {
    %c0_i32 = arith.constant 0 : i32
    %c0_i32_0 = arith.constant 0 : i32
    %c0_i32_1 = arith.constant 0 : i32
    return %c0_i32, %c0_i32_0 : i32, i32
  }
  func.func @transform_2(%arg0: i32) -> (i32, i32) {
    %c0_i32 = arith.constant 0 : i32
    %c0_i32_0 = arith.constant 0 : i32
    %c0_i32_1 = arith.constant 0 : i32
    return %c0_i32, %c0_i32_0 : i32, i32
  }
  func.func @transform_3(%arg0: i32) -> (i32, i32) {
    %c0_i32 = arith.constant 0 : i32
    %c0_i32_0 = arith.constant 0 : i32
    %c0_i32_1 = arith.constant 0 : i32
    return %c0_i32, %c0_i32_0 : i32, i32
  }
  func.func @transform_4(%arg0: i32) -> (i32, i32) {
    %c0_i32 = arith.constant 0 : i32
    %c0_i32_0 = arith.constant 0 : i32
    %c0_i32_1 = arith.constant 0 : i32
    return %c0_i32, %c0_i32_0 : i32, i32
  }
  func.func @transform_5(%arg0: i32) -> (i32, i32) {
    %c0_i32 = arith.constant 0 : i32
    %c0_i32_0 = arith.constant 0 : i32
    %c0_i32_1 = arith.constant 0 : i32
    return %c0_i32, %c0_i32_0 : i32, i32
  }
  func.func @transform_6(%arg0: i32) -> (i32, i32) {
    %c0_i32 = arith.constant 0 : i32
    %c0_i32_0 = arith.constant 0 : i32
    %c0_i32_1 = arith.constant 0 : i32
    return %c0_i32, %c0_i32_0 : i32, i32
  }
  func.func @transform_7(%arg0: i32) -> (i32, i32) {
    %c0_i32 = arith.constant 0 : i32
    %c0_i32_0 = arith.constant 0 : i32
    return %arg0, %c0_i32 : i32, i32
  }
}

module attributes {stable_mosaic.version = 11 : i64} {
  func.func @_attn_block_kernel(%arg0: i32, %arg1: memref<1x5x32xf32, #tpu.memory_space<vmem>>, %arg2: memref<1x32xf32, #tpu.memory_space<vmem>>, %arg3: memref<1x32xf32, #tpu.memory_space<vmem>>, %arg4: memref<32x48xbf16, #tpu.memory_space<vmem>>, %arg5: memref<16x32xbf16, #tpu.memory_space<vmem>>, %arg6: memref<1x32xf32, #tpu.memory_space<vmem>>, %arg7: memref<1x5x32xf32, #tpu.memory_space<vmem>>) attributes {dimension_semantics = [#tpu.dimension_semantics<parallel>], iteration_bounds = array<i64: 2>, scalar_prefetch = 0 : i64, scratch_operands = 0 : i64, tpu.core_type = #tpu.core_type<tc>, window_params = [{transform_indices = @transform_0, window_bounds = array<i64: 1, 5, 32>}, {pipeline_mode = #tpu.pipeline_mode<synchronous>, transform_indices = @transform_1, window_bounds = array<i64: 1, 32>}, {pipeline_mode = #tpu.pipeline_mode<synchronous>, transform_indices = @transform_2, window_bounds = array<i64: 1, 32>}, {pipeline_mode = #tpu.pipeline_mode<synchronous>, transform_indices = @transform_3, window_bounds = array<i64: 32, 48>}, {pipeline_mode = #tpu.pipeline_mode<synchronous>, transform_indices = @transform_4, window_bounds = array<i64: 16, 32>}, {pipeline_mode = #tpu.pipeline_mode<synchronous>, transform_indices = @transform_5, window_bounds = array<i64: 1, 32>}, {transform_indices = @transform_6, window_bounds = array<i64: 1, 5, 32>}]} {
    %c0 = arith.constant 0 : index
    %c0_0 = arith.constant 0 : index
    %c0_1 = arith.constant 0 : index
    %0 = vector.load %arg1[%c0, %c0_0, %c0_1] : memref<1x5x32xf32, #tpu.memory_space<vmem>>, vector<1x5x32xf32>
    %1 = vector.shape_cast %0 : vector<1x5x32xf32> to vector<5x32xf32>
    %cst = arith.constant dense<0.000000e+00> : vector<5xf32>
    %2 = vector.multi_reduction <add>, %1, %cst [1] : vector<5x32xf32> to vector<5xf32>
    %3 = vector.shape_cast %2 : vector<5xf32> to vector<5x1xf32>
    %cst_2 = arith.constant 3.200000e+01 : f32
    %4 = vector.broadcast %cst_2 : f32 to vector<5x1xf32>
    %5 = arith.divf %3, %4 : vector<5x1xf32>
    %6 = vector.broadcast %5 : vector<5x1xf32> to vector<5x32xf32>
    %7 = arith.subf %1, %6 : vector<5x32xf32>
    %8 = arith.mulf %7, %7 : vector<5x32xf32>
    %cst_3 = arith.constant dense<0.000000e+00> : vector<5xf32>
    %9 = vector.multi_reduction <add>, %8, %cst_3 [1] : vector<5x32xf32> to vector<5xf32>
    %10 = vector.shape_cast %9 : vector<5xf32> to vector<5x1xf32>
    %cst_4 = arith.constant 3.200000e+01 : f32
    %11 = vector.broadcast %cst_4 : f32 to vector<5x1xf32>
    %12 = arith.divf %10, %11 : vector<5x1xf32>
    %13 = vector.broadcast %5 : vector<5x1xf32> to vector<5x32xf32>
    %14 = arith.subf %1, %13 : vector<5x32xf32>
    %cst_5 = arith.constant 9.99999974E-6 : f32
    %15 = vector.broadcast %cst_5 : f32 to vector<5x1xf32>
    %16 = arith.addf %12, %15 : vector<5x1xf32>
    %17 = math.rsqrt %16 : vector<5x1xf32>
    %18 = vector.broadcast %17 : vector<5x1xf32> to vector<5x32xf32>
    %19 = arith.mulf %14, %18 : vector<5x32xf32>
    %c0_6 = arith.constant 0 : index
    %c0_7 = arith.constant 0 : index
    %20 = vector.load %arg2[%c0_6, %c0_7] : memref<1x32xf32, #tpu.memory_space<vmem>>, vector<1x32xf32>
    %21 = vector.broadcast %20 : vector<1x32xf32> to vector<5x32xf32>
    %22 = arith.mulf %19, %21 : vector<5x32xf32>
    %c0_8 = arith.constant 0 : index
    %c0_9 = arith.constant 0 : index
    %23 = vector.load %arg3[%c0_8, %c0_9] : memref<1x32xf32, #tpu.memory_space<vmem>>, vector<1x32xf32>
    %24 = vector.broadcast %23 : vector<1x32xf32> to vector<5x32xf32>
    %25 = arith.addf %22, %24 : vector<5x32xf32>
    %26 = arith.truncf %25 : vector<5x32xf32> to vector<5x32xbf16>
    %c0_10 = arith.constant 0 : index
    %c0_11 = arith.constant 0 : index
    %27 = vector.load %arg4[%c0_10, %c0_11] : memref<32x48xbf16, #tpu.memory_space<vmem>>, vector<32x48xbf16>
    %cst_12 = arith.constant dense<0.000000e+00> : vector<5x48xf32>
    %28 = tpu.matmul %26, %27, %cst_12 {dimension_numbers = #tpu.dot_dimension_numbers<[1], [0], [0], [1], [0, 0, 1, 1], [], []>} : vector<5x32xbf16>, vector<32x48xbf16>, vector<5x48xf32> -> vector<5x48xf32>
    %29 = vector.extract_strided_slice %28 {offsets = [0, 0], sizes = [5, 8], strides = [1, 1]} : vector<5x48xf32> to vector<5x8xf32>
    %30 = arith.truncf %29 : vector<5x8xf32> to vector<5x8xbf16>
    %31 = vector.extract_strided_slice %28 {offsets = [0, 16], sizes = [5, 8], strides = [1, 1]} : vector<5x48xf32> to vector<5x8xf32>
    %32 = arith.truncf %31 : vector<5x8xf32> to vector<5x8xbf16>
    %33 = vector.extract_strided_slice %28 {offsets = [0, 32], sizes = [5, 8], strides = [1, 1]} : vector<5x48xf32> to vector<5x8xf32>
    %34 = arith.truncf %33 : vector<5x8xf32> to vector<5x8xbf16>
    %cst_13 = arith.constant dense<0.000000e+00> : vector<5x5xf32>
    %35 = tpu.matmul %30, %32, %cst_13 {dimension_numbers = #tpu.dot_dimension_numbers<[1], [1], [0], [0], [0, 0, 1, 0], [], []>} : vector<5x8xbf16>, vector<5x8xbf16>, vector<5x5xf32> -> vector<5x5xf32>
    %cst_14 = arith.constant 0.353553385 : f32
    %36 = vector.broadcast %cst_14 : f32 to vector<5x5xf32>
    %37 = arith.mulf %35, %36 : vector<5x5xf32>
    %cst_15 = arith.constant dense<0xFF800000> : vector<5xf32>
    %38 = vector.multi_reduction <maximumf>, %37, %cst_15 [1] : vector<5x5xf32> to vector<5xf32>
    %39 = vector.shape_cast %38 : vector<5xf32> to vector<5x1xf32>
    %40 = vector.broadcast %39 : vector<5x1xf32> to vector<5x5xf32>
    %41 = arith.subf %37, %40 : vector<5x5xf32>
    %42 = math.exp %41 : vector<5x5xf32>
    %cst_16 = arith.constant dense<0.000000e+00> : vector<5xf32>
    %43 = vector.multi_reduction <add>, %42, %cst_16 [1] : vector<5x5xf32> to vector<5xf32>
    %44 = vector.shape_cast %43 : vector<5xf32> to vector<5x1xf32>
    %45 = tpu.reciprocal %44 {approx = true} : vector<5x1xf32> -> vector<5x1xf32>
    %46 = vector.broadcast %45 : vector<5x1xf32> to vector<5x5xf32>
    %47 = arith.mulf %42, %46 : vector<5x5xf32>
    %48 = arith.truncf %47 : vector<5x5xf32> to vector<5x5xbf16>
    %cst_17 = arith.constant dense<0.000000e+00> : vector<5x8xf32>
    %49 = tpu.matmul %48, %34, %cst_17 {dimension_numbers = #tpu.dot_dimension_numbers<[1], [0], [0], [1], [0, 0, 1, 1], [], []>} : vector<5x5xbf16>, vector<5x8xbf16>, vector<5x8xf32> -> vector<5x8xf32>
    %50 = vector.extract_strided_slice %28 {offsets = [0, 8], sizes = [5, 8], strides = [1, 1]} : vector<5x48xf32> to vector<5x8xf32>
    %51 = arith.truncf %50 : vector<5x8xf32> to vector<5x8xbf16>
    %52 = vector.extract_strided_slice %28 {offsets = [0, 24], sizes = [5, 8], strides = [1, 1]} : vector<5x48xf32> to vector<5x8xf32>
    %53 = arith.truncf %52 : vector<5x8xf32> to vector<5x8xbf16>
    %54 = vector.extract_strided_slice %28 {offsets = [0, 40], sizes = [5, 8], strides = [1, 1]} : vector<5x48xf32> to vector<5x8xf32>
    %55 = arith.truncf %54 : vector<5x8xf32> to vector<5x8xbf16>
    %cst_18 = arith.constant dense<0.000000e+00> : vector<5x5xf32>
    %56 = tpu.matmul %51, %53, %cst_18 {dimension_numbers = #tpu.dot_dimension_numbers<[1], [1], [0], [0], [0, 0, 1, 0], [], []>} : vector<5x8xbf16>, vector<5x8xbf16>, vector<5x5xf32> -> vector<5x5xf32>
    %cst_19 = arith.constant 0.353553385 : f32
    %57 = vector.broadcast %cst_19 : f32 to vector<5x5xf32>
    %58 = arith.mulf %56, %57 : vector<5x5xf32>
    %cst_20 = arith.constant dense<0xFF800000> : vector<5xf32>
    %59 = vector.multi_reduction <maximumf>, %58, %cst_20 [1] : vector<5x5xf32> to vector<5xf32>
    %60 = vector.shape_cast %59 : vector<5xf32> to vector<5x1xf32>
    %61 = vector.broadcast %60 : vector<5x1xf32> to vector<5x5xf32>
    %62 = arith.subf %58, %61 : vector<5x5xf32>
    %63 = math.exp %62 : vector<5x5xf32>
    %cst_21 = arith.constant dense<0.000000e+00> : vector<5xf32>
    %64 = vector.multi_reduction <add>, %63, %cst_21 [1] : vector<5x5xf32> to vector<5xf32>
    %65 = vector.shape_cast %64 : vector<5xf32> to vector<5x1xf32>
    %66 = tpu.reciprocal %65 {approx = true} : vector<5x1xf32> -> vector<5x1xf32>
    %67 = vector.broadcast %66 : vector<5x1xf32> to vector<5x5xf32>
    %68 = arith.mulf %63, %67 : vector<5x5xf32>
    %69 = arith.truncf %68 : vector<5x5xf32> to vector<5x5xbf16>
    %cst_22 = arith.constant dense<0.000000e+00> : vector<5x8xf32>
    %70 = tpu.matmul %69, %55, %cst_22 {dimension_numbers = #tpu.dot_dimension_numbers<[1], [0], [0], [1], [0, 0, 1, 1], [], []>} : vector<5x5xbf16>, vector<5x8xbf16>, vector<5x8xf32> -> vector<5x8xf32>
    %71 = tpu.concatenate %49, %70 in 1 : vector<5x8xf32>, vector<5x8xf32> -> vector<5x16xf32>
    %72 = arith.truncf %71 : vector<5x16xf32> to vector<5x16xbf16>
    %c0_23 = arith.constant 0 : index
    %c0_24 = arith.constant 0 : index
    %73 = vector.load %arg5[%c0_23, %c0_24] : memref<16x32xbf16, #tpu.memory_space<vmem>>, vector<16x32xbf16>
    %cst_25 = arith.constant dense<0.000000e+00> : vector<5x32xf32>
    %74 = tpu.matmul %72, %73, %cst_25 {dimension_numbers = #tpu.dot_dimension_numbers<[1], [0], [0], [1], [0, 0, 1, 1], [], []>} : vector<5x16xbf16>, vector<16x32xbf16>, vector<5x32xf32> -> vector<5x32xf32>
    %c0_26 = arith.constant 0 : index
    %c0_27 = arith.constant 0 : index
    %75 = vector.load %arg6[%c0_26, %c0_27] : memref<1x32xf32, #tpu.memory_space<vmem>>, vector<1x32xf32>
    %76 = vector.broadcast %75 : vector<1x32xf32> to vector<5x32xf32>
    %77 = arith.addf %74, %76 : vector<5x32xf32>
    %78 = arith.addf %1, %77 : vector<5x32xf32>
    %c0_28 = arith.constant 0 : index
    %c0_29 = arith.constant 0 : index
    %c0_30 = arith.constant 0 : index
    %79 = vector.load %arg7[%c0_28, %c0_29, %c0_30] : memref<1x5x32xf32, #tpu.memory_space<vmem>>, vector<1x5x32xf32>
    %80 = vector.shape_cast %79 : vector<1x5x32xf32> to vector<5x32xf32>
    %81 = vector.shape_cast %78 : vector<5x32xf32> to vector<1x5x32xf32>
    tpu.vector_store %arg7[%c0_28, %c0_29, %c0_30], %81 {strides = array<i32>} : memref<1x5x32xf32, #tpu.memory_space<vmem>>, vector<1x5x32xf32>,
    return
  }
  func.func @transform_0(%arg0: i32) -> (i32, i32, i32) {
    %c0_i32 = arith.constant 0 : i32
    %c0_i32_0 = arith.constant 0 : i32
    %c0_i32_1 = arith.constant 0 : i32
    return %arg0, %c0_i32, %c0_i32_0 : i32, i32, i32
  }
  func.func @transform_1(%arg0: i32) -> (i32, i32) {
    %c0_i32 = arith.constant 0 : i32
    %c0_i32_0 = arith.constant 0 : i32
    %c0_i32_1 = arith.constant 0 : i32
    return %c0_i32, %c0_i32_0 : i32, i32
  }
  func.func @transform_2(%arg0: i32) -> (i32, i32) {
    %c0_i32 = arith.constant 0 : i32
    %c0_i32_0 = arith.constant 0 : i32
    %c0_i32_1 = arith.constant 0 : i32
    return %c0_i32, %c0_i32_0 : i32, i32
  }
  func.func @transform_3(%arg0: i32) -> (i32, i32) {
    %c0_i32 = arith.constant 0 : i32
    %c0_i32_0 = arith.constant 0 : i32
    %c0_i32_1 = arith.constant 0 : i32
    return %c0_i32, %c0_i32_0 : i32, i32
  }
  func.func @transform_4(%arg0: i32) -> (i32, i32) {
    %c0_i32 = arith.constant 0 : i32
    %c0_i32_0 = arith.constant 0 : i32
    %c0_i32_1 = arith.constant 0 : i32
    return %c0_i32, %c0_i32_0 : i32, i32
  }
  func.func @transform_5(%arg0: i32) -> (i32, i32) {
    %c0_i32 = arith.constant 0 : i32
    %c0_i32_0 = arith.constant 0 : i32
    %c0_i32_1 = arith.constant 0 : i32
    return %c0_i32, %c0_i32_0 : i32, i32
  }
  func.func @transform_6(%arg0: i32) -> (i32, i32, i32) {
    %c0_i32 = arith.constant 0 : i32
    %c0_i32_0 = arith.constant 0 : i32
    %c0_i32_1 = arith.constant 0 : i32
    return %arg0, %c0_i32, %c0_i32_0 : i32, i32, i32
  }
}

module attributes {stable_mosaic.version = 11 : i64} {
  func.func @_ln_linear_kernel(%arg0: i32, %arg1: memref<2x32xf32, #tpu.memory_space<vmem>>, %arg2: memref<1x32xf32, #tpu.memory_space<vmem>>, %arg3: memref<1x32xf32, #tpu.memory_space<vmem>>, %arg4: memref<32x10xbf16, #tpu.memory_space<vmem>>, %arg5: memref<1x10xf32, #tpu.memory_space<vmem>>, %arg6: memref<2x10xf32, #tpu.memory_space<vmem>>) attributes {dimension_semantics = [#tpu.dimension_semantics<parallel>], iteration_bounds = array<i64: 1>, scalar_prefetch = 0 : i64, scratch_operands = 0 : i64, tpu.core_type = #tpu.core_type<tc>, window_params = [{transform_indices = @transform_0, window_bounds = array<i64: 2, 32>}, {pipeline_mode = #tpu.pipeline_mode<synchronous>, transform_indices = @transform_1, window_bounds = array<i64: 1, 32>}, {pipeline_mode = #tpu.pipeline_mode<synchronous>, transform_indices = @transform_2, window_bounds = array<i64: 1, 32>}, {pipeline_mode = #tpu.pipeline_mode<synchronous>, transform_indices = @transform_3, window_bounds = array<i64: 32, 10>}, {pipeline_mode = #tpu.pipeline_mode<synchronous>, transform_indices = @transform_4, window_bounds = array<i64: 1, 10>}, {transform_indices = @transform_5, window_bounds = array<i64: 2, 10>}]} {
    %c0 = arith.constant 0 : index
    %c0_0 = arith.constant 0 : index
    %0 = vector.load %arg1[%c0, %c0_0] : memref<2x32xf32, #tpu.memory_space<vmem>>, vector<2x32xf32>
    %cst = arith.constant dense<0.000000e+00> : vector<2xf32>
    %1 = vector.multi_reduction <add>, %0, %cst [1] : vector<2x32xf32> to vector<2xf32>
    %2 = vector.shape_cast %1 : vector<2xf32> to vector<2x1xf32>
    %cst_1 = arith.constant 3.200000e+01 : f32
    %3 = vector.broadcast %cst_1 : f32 to vector<2x1xf32>
    %4 = arith.divf %2, %3 : vector<2x1xf32>
    %5 = vector.broadcast %4 : vector<2x1xf32> to vector<2x32xf32>
    %6 = arith.subf %0, %5 : vector<2x32xf32>
    %7 = arith.mulf %6, %6 : vector<2x32xf32>
    %cst_2 = arith.constant dense<0.000000e+00> : vector<2xf32>
    %8 = vector.multi_reduction <add>, %7, %cst_2 [1] : vector<2x32xf32> to vector<2xf32>
    %9 = vector.shape_cast %8 : vector<2xf32> to vector<2x1xf32>
    %cst_3 = arith.constant 3.200000e+01 : f32
    %10 = vector.broadcast %cst_3 : f32 to vector<2x1xf32>
    %11 = arith.divf %9, %10 : vector<2x1xf32>
    %12 = vector.broadcast %4 : vector<2x1xf32> to vector<2x32xf32>
    %13 = arith.subf %0, %12 : vector<2x32xf32>
    %cst_4 = arith.constant 9.99999974E-6 : f32
    %14 = vector.broadcast %cst_4 : f32 to vector<2x1xf32>
    %15 = arith.addf %11, %14 : vector<2x1xf32>
    %16 = math.rsqrt %15 : vector<2x1xf32>
    %17 = vector.broadcast %16 : vector<2x1xf32> to vector<2x32xf32>
    %18 = arith.mulf %13, %17 : vector<2x32xf32>
    %c0_5 = arith.constant 0 : index
    %c0_6 = arith.constant 0 : index
    %19 = vector.load %arg2[%c0_5, %c0_6] : memref<1x32xf32, #tpu.memory_space<vmem>>, vector<1x32xf32>
    %20 = vector.broadcast %19 : vector<1x32xf32> to vector<2x32xf32>
    %21 = arith.mulf %18, %20 : vector<2x32xf32>
    %c0_7 = arith.constant 0 : index
    %c0_8 = arith.constant 0 : index
    %22 = vector.load %arg3[%c0_7, %c0_8] : memref<1x32xf32, #tpu.memory_space<vmem>>, vector<1x32xf32>
    %23 = vector.broadcast %22 : vector<1x32xf32> to vector<2x32xf32>
    %24 = arith.addf %21, %23 : vector<2x32xf32>
    %25 = arith.truncf %24 : vector<2x32xf32> to vector<2x32xbf16>
    %c0_9 = arith.constant 0 : index
    %c0_10 = arith.constant 0 : index
    %26 = vector.load %arg4[%c0_9, %c0_10] : memref<32x10xbf16, #tpu.memory_space<vmem>>, vector<32x10xbf16>
    %cst_11 = arith.constant dense<0.000000e+00> : vector<2x10xf32>
    %27 = tpu.matmul %25, %26, %cst_11 {dimension_numbers = #tpu.dot_dimension_numbers<[1], [0], [0], [1], [0, 0, 1, 1], [], []>} : vector<2x32xbf16>, vector<32x10xbf16>, vector<2x10xf32> -> vector<2x10xf32>
    %c0_12 = arith.constant 0 : index
    %c0_13 = arith.constant 0 : index
    %28 = vector.load %arg5[%c0_12, %c0_13] : memref<1x10xf32, #tpu.memory_space<vmem>>, vector<1x10xf32>
    %29 = vector.broadcast %28 : vector<1x10xf32> to vector<2x10xf32>
    %30 = arith.addf %27, %29 : vector<2x10xf32>
    %c0_14 = arith.constant 0 : index
    %c0_15 = arith.constant 0 : index
    %31 = vector.load %arg6[%c0_14, %c0_15] : memref<2x10xf32, #tpu.memory_space<vmem>>, vector<2x10xf32>
    tpu.vector_store %arg6[%c0_14, %c0_15], %30 {strides = array<i32>} : memref<2x10xf32, #tpu.memory_space<vmem>>, vector<2x10xf32>,
    return
  }
  func.func @transform_0(%arg0: i32) -> (i32, i32) {
    %c0_i32 = arith.constant 0 : i32
    %c0_i32_0 = arith.constant 0 : i32
    return %arg0, %c0_i32 : i32, i32
  }
  func.func @transform_1(%arg0: i32) -> (i32, i32) {
    %c0_i32 = arith.constant 0 : i32
    %c0_i32_0 = arith.constant 0 : i32
    %c0_i32_1 = arith.constant 0 : i32
    return %c0_i32, %c0_i32_0 : i32, i32
  }
  func.func @transform_2(%arg0: i32) -> (i32, i32) {
    %c0_i32 = arith.constant 0 : i32
    %c0_i32_0 = arith.constant 0 : i32
    %c0_i32_1 = arith.constant 0 : i32
    return %c0_i32, %c0_i32_0 : i32, i32
  }
  func.func @transform_3(%arg0: i32) -> (i32, i32) {
    %c0_i32 = arith.constant 0 : i32
    %c0_i32_0 = arith.constant 0 : i32
    %c0_i32_1 = arith.constant 0 : i32
    return %c0_i32, %c0_i32_0 : i32, i32
  }
  func.func @transform_4(%arg0: i32) -> (i32, i32) {
    %c0_i32 = arith.constant 0 : i32
    %c0_i32_0 = arith.constant 0 : i32
    %c0_i32_1 = arith.constant 0 : i32
    return %c0_i32, %c0_i32_0 : i32, i32
  }
  func.func @transform_5(%arg0: i32) -> (i32, i32) {
    %c0_i32 = arith.constant 0 : i32
    %c0_i32_0 = arith.constant 0 : i32
    return %arg0, %c0_i32 : i32, i32
  }
}

module attributes {stable_mosaic.version = 11 : i64} {
  func.func @_ff_kernel(%arg0: i32, %arg1: memref<10x32xf32, #tpu.memory_space<vmem>>, %arg2: memref<1x32xf32, #tpu.memory_space<vmem>>, %arg3: memref<1x32xf32, #tpu.memory_space<vmem>>, %arg4: memref<32x128xbf16, #tpu.memory_space<vmem>>, %arg5: memref<1x128xf32, #tpu.memory_space<vmem>>, %arg6: memref<128x32xbf16, #tpu.memory_space<vmem>>, %arg7: memref<1x32xf32, #tpu.memory_space<vmem>>, %arg8: memref<10x32xf32, #tpu.memory_space<vmem>>) attributes {dimension_semantics = [#tpu.dimension_semantics<parallel>], iteration_bounds = array<i64: 1>, scalar_prefetch = 0 : i64, scratch_operands = 0 : i64, tpu.core_type = #tpu.core_type<tc>, window_params = [{transform_indices = @transform_0, window_bounds = array<i64: 10, 32>}, {pipeline_mode = #tpu.pipeline_mode<synchronous>, transform_indices = @transform_1, window_bounds = array<i64: 1, 32>}, {pipeline_mode = #tpu.pipeline_mode<synchronous>, transform_indices = @transform_2, window_bounds = array<i64: 1, 32>}, {pipeline_mode = #tpu.pipeline_mode<synchronous>, transform_indices = @transform_3, window_bounds = array<i64: 32, 128>}, {pipeline_mode = #tpu.pipeline_mode<synchronous>, transform_indices = @transform_4, window_bounds = array<i64: 1, 128>}, {pipeline_mode = #tpu.pipeline_mode<synchronous>, transform_indices = @transform_5, window_bounds = array<i64: 128, 32>}, {pipeline_mode = #tpu.pipeline_mode<synchronous>, transform_indices = @transform_6, window_bounds = array<i64: 1, 32>}, {transform_indices = @transform_7, window_bounds = array<i64: 10, 32>}]} {
    %c0 = arith.constant 0 : index
    %c0_0 = arith.constant 0 : index
    %0 = vector.load %arg1[%c0, %c0_0] : memref<10x32xf32, #tpu.memory_space<vmem>>, vector<10x32xf32>
    %cst = arith.constant dense<0.000000e+00> : vector<10xf32>
    %1 = vector.multi_reduction <add>, %0, %cst [1] : vector<10x32xf32> to vector<10xf32>
    %2 = vector.shape_cast %1 : vector<10xf32> to vector<10x1xf32>
    %cst_1 = arith.constant 3.200000e+01 : f32
    %3 = vector.broadcast %cst_1 : f32 to vector<10x1xf32>
    %4 = arith.divf %2, %3 : vector<10x1xf32>
    %5 = vector.broadcast %4 : vector<10x1xf32> to vector<10x32xf32>
    %6 = arith.subf %0, %5 : vector<10x32xf32>
    %7 = arith.mulf %6, %6 : vector<10x32xf32>
    %cst_2 = arith.constant dense<0.000000e+00> : vector<10xf32>
    %8 = vector.multi_reduction <add>, %7, %cst_2 [1] : vector<10x32xf32> to vector<10xf32>
    %9 = vector.shape_cast %8 : vector<10xf32> to vector<10x1xf32>
    %cst_3 = arith.constant 3.200000e+01 : f32
    %10 = vector.broadcast %cst_3 : f32 to vector<10x1xf32>
    %11 = arith.divf %9, %10 : vector<10x1xf32>
    %12 = vector.broadcast %4 : vector<10x1xf32> to vector<10x32xf32>
    %13 = arith.subf %0, %12 : vector<10x32xf32>
    %cst_4 = arith.constant 9.99999974E-6 : f32
    %14 = vector.broadcast %cst_4 : f32 to vector<10x1xf32>
    %15 = arith.addf %11, %14 : vector<10x1xf32>
    %16 = math.rsqrt %15 : vector<10x1xf32>
    %17 = vector.broadcast %16 : vector<10x1xf32> to vector<10x32xf32>
    %18 = arith.mulf %13, %17 : vector<10x32xf32>
    %c0_5 = arith.constant 0 : index
    %c0_6 = arith.constant 0 : index
    %19 = vector.load %arg2[%c0_5, %c0_6] : memref<1x32xf32, #tpu.memory_space<vmem>>, vector<1x32xf32>
    %20 = vector.broadcast %19 : vector<1x32xf32> to vector<10x32xf32>
    %21 = arith.mulf %18, %20 : vector<10x32xf32>
    %c0_7 = arith.constant 0 : index
    %c0_8 = arith.constant 0 : index
    %22 = vector.load %arg3[%c0_7, %c0_8] : memref<1x32xf32, #tpu.memory_space<vmem>>, vector<1x32xf32>
    %23 = vector.broadcast %22 : vector<1x32xf32> to vector<10x32xf32>
    %24 = arith.addf %21, %23 : vector<10x32xf32>
    %25 = arith.truncf %24 : vector<10x32xf32> to vector<10x32xbf16>
    %c0_9 = arith.constant 0 : index
    %c0_10 = arith.constant 0 : index
    %26 = vector.load %arg4[%c0_9, %c0_10] : memref<32x128xbf16, #tpu.memory_space<vmem>>, vector<32x128xbf16>
    %cst_11 = arith.constant dense<0.000000e+00> : vector<10x128xf32>
    %27 = tpu.matmul %25, %26, %cst_11 {dimension_numbers = #tpu.dot_dimension_numbers<[1], [0], [0], [1], [0, 0, 1, 1], [], []>} : vector<10x32xbf16>, vector<32x128xbf16>, vector<10x128xf32> -> vector<10x128xf32>
    %c0_12 = arith.constant 0 : index
    %c0_13 = arith.constant 0 : index
    %28 = vector.load %arg5[%c0_12, %c0_13] : memref<1x128xf32, #tpu.memory_space<vmem>>, vector<1x128xf32>
    %29 = vector.broadcast %28 : vector<1x128xf32> to vector<10x128xf32>
    %30 = arith.addf %27, %29 : vector<10x128xf32>
    %cst_14 = arith.constant 5.000000e-01 : f32
    %31 = vector.broadcast %cst_14 : f32 to vector<10x128xf32>
    %32 = arith.mulf %31, %30 : vector<10x128xf32>
    %cst_15 = arith.constant 0.707106769 : f32
    %33 = vector.broadcast %cst_15 : f32 to vector<10x128xf32>
    %34 = arith.mulf %30, %33 : vector<10x128xf32>
    %35 = math.erf %34 : vector<10x128xf32>
    %cst_16 = arith.constant 1.000000e+00 : f32
    %36 = vector.broadcast %cst_16 : f32 to vector<10x128xf32>
    %37 = arith.addf %36, %35 : vector<10x128xf32>
    %38 = arith.mulf %32, %37 : vector<10x128xf32>
    %39 = arith.truncf %38 : vector<10x128xf32> to vector<10x128xbf16>
    %c0_17 = arith.constant 0 : index
    %c0_18 = arith.constant 0 : index
    %40 = vector.load %arg6[%c0_17, %c0_18] : memref<128x32xbf16, #tpu.memory_space<vmem>>, vector<128x32xbf16>
    %cst_19 = arith.constant dense<0.000000e+00> : vector<10x32xf32>
    %41 = tpu.matmul %39, %40, %cst_19 {dimension_numbers = #tpu.dot_dimension_numbers<[1], [0], [0], [1], [0, 0, 1, 1], [], []>} : vector<10x128xbf16>, vector<128x32xbf16>, vector<10x32xf32> -> vector<10x32xf32>
    %c0_20 = arith.constant 0 : index
    %c0_21 = arith.constant 0 : index
    %42 = vector.load %arg7[%c0_20, %c0_21] : memref<1x32xf32, #tpu.memory_space<vmem>>, vector<1x32xf32>
    %43 = vector.broadcast %42 : vector<1x32xf32> to vector<10x32xf32>
    %44 = arith.addf %41, %43 : vector<10x32xf32>
    %45 = arith.addf %0, %44 : vector<10x32xf32>
    %c0_22 = arith.constant 0 : index
    %c0_23 = arith.constant 0 : index
    %46 = vector.load %arg8[%c0_22, %c0_23] : memref<10x32xf32, #tpu.memory_space<vmem>>, vector<10x32xf32>
    tpu.vector_store %arg8[%c0_22, %c0_23], %45 {strides = array<i32>} : memref<10x32xf32, #tpu.memory_space<vmem>>, vector<10x32xf32>,
    return
  }
  func.func @transform_0(%arg0: i32) -> (i32, i32) {
    %c0_i32 = arith.constant 0 : i32
    %c0_i32_0 = arith.constant 0 : i32
    return %arg0, %c0_i32 : i32, i32
  }
  func.func @transform_1(%arg0: i32) -> (i32, i32) {
    %c0_i32 = arith.constant 0 : i32
    %c0_i32_0 = arith.constant 0 : i32
    %c0_i32_1 = arith.constant 0 : i32
    return %c0_i32, %c0_i32_0 : i32, i32
  }
  func.func @transform_2(%arg0: i32) -> (i32, i32) {
    %c0_i32 = arith.constant 0 : i32
    %c0_i32_0 = arith.constant 0 : i32
    %c0_i32_1 = arith.constant 0 : i32
    return %c0_i32, %c0_i32_0 : i32, i32
  }
  func.func @transform_3(%arg0: i32) -> (i32, i32) {
    %c0_i32 = arith.constant 0 : i32
    %c0_i32_0 = arith.constant 0 : i32
    %c0_i32_1 = arith.constant 0 : i32
    return %c0_i32, %c0_i32_0 : i32, i32
  }
  func.func @transform_4(%arg0: i32) -> (i32, i32) {
    %c0_i32 = arith.constant 0 : i32
    %c0_i32_0 = arith.constant 0 : i32
    %c0_i32_1 = arith.constant 0 : i32
    return %c0_i32, %c0_i32_0 : i32, i32
  }
  func.func @transform_5(%arg0: i32) -> (i32, i32) {
    %c0_i32 = arith.constant 0 : i32
    %c0_i32_0 = arith.constant 0 : i32
    %c0_i32_1 = arith.constant 0 : i32
    return %c0_i32, %c0_i32_0 : i32, i32
  }
  func.func @transform_6(%arg0: i32) -> (i32, i32) {
    %c0_i32 = arith.constant 0 : i32
    %c0_i32_0 = arith.constant 0 : i32
    %c0_i32_1 = arith.constant 0 : i32
    return %c0_i32, %c0_i32_0 : i32, i32
  }
  func.func @transform_7(%arg0: i32) -> (i32, i32) {
    %c0_i32 = arith.constant 0 : i32
    %c0_i32_0 = arith.constant 0 : i32
    return %arg0, %c0_i32 : i32, i32
  }
}

</mosaic_0001>

<bundles_post_ra>
// kernel: _lambda_.12
= control target key start
LH: loop header
LB: loop body
LE: loop exit
PB: predicated region body
PF: predicated region fallthrough
CT: control target
= control target key end

     0   :  { %vm42_vm0 = vcmask 1045504   ;;  %vm35_vm1 = vcmask 97280   ;;  %vm95_vm2 = vcmask 130048   ;;  %s169_s1 = inlined_call_operand.vmem [shape: bf16[12,16], index: 1, kind: input, shape index: {}]   ;;  %s170_s0 = inlined_call_operand.vmem [shape: f32[32,12], index: 0, kind: input, shape index: {}]   ;;  %s171_s2 = inlined_call_operand.vmem [shape: f32[1,16], index: 2, kind: input, shape index: {}]   ;;  %s172_s3 = inlined_call_operand.vmem [shape: f32[32,16], index: 3, kind: output, shape index: {}]  }
   0x1   :  { %v118_v0 = vld [vmem:[%s169_s1] sm:$0x3f]   ;;  %v16_v2 = vld [vmem:[%s170_s0 + $0x8] sm:$0xff]  ;;  %v17_v3 = vld [vmem:[%s170_s0 + $0x10] sm:$0xff] }
   0x2   :  { %v15_v1 = vld [vmem:[%s170_s0] sm:$0xff]  ;;  %117 = vmatprep.subr.msk.bf16.mxu0 %vm42_vm0, %v118_v0  ;;  %v44_v4 = vsel %vm42_vm0, %v118_v0, 0  ;;  %v18_v6 = vld [vmem:[%s170_s0 + $0x18] sm:$0xff] }
   0x3   :  { %v19_v5 = vpack.c.bf16 %v16_v2, %v15_v1  ;;  %112 = vmatpush3.bf16.msra.mxu0 %v44_v4  ;;  %v20_v7 = vpack.c.bf16 %v18_v6, %v17_v3  ;;  %v104_v8 = vld [vmem:[%s171_s2] ss:$0 sm:$0xff] }
   0x5   :  { %113 = vmatprep.mubr.msk.bf16.mxu0 %vm35_vm1, %v19_v5 }
   0x6   :  { %114 = vmatmul.mubr.msk.bf16.vlgmr.msra.gmra.mxu0 %vm35_vm1, %v20_v7 }
  0xc6   :  { %v115_v9 = vpop.f32.mrf.mxu0 }
  0xc7   :  { %v89_v10 = vadd.f32 %v115_v9, %v104_v8 }
  0xc8   :  { %v80_v11 = vpop.f32.mrf.mxu0 }
  0xc9   :  { %98 = vst.msk [vmem:[%s172_s3 + $0x10] sm:$0xff] %vm95_vm2, %v89_v10  ;;  %v81_v12 = vadd.f32 %v104_v8, %v80_v11 }
  0xca   :  { %v116_v13 = vpop.f32.mrf.mxu0 }
  0xcb   :  { %96 = vst.msk [vmem:[%s172_s3] sm:$0xff] %vm95_vm2, %v81_v12  ;;  %v92_v14 = vadd.f32 %v116_v13, %v104_v8 }
  0xcc   :  { %v83_v15 = vpop.f32.mrf.mxu0 }
  0xcd   :  { %99 = vst.msk [vmem:[%s172_s3 + $0x18] sm:$0xff] %vm95_vm2, %v92_v14  ;;  %v84_v16 = vadd.f32 %v104_v8, %v83_v15 }
  0xcf   :  { %97 = vst.msk [vmem:[%s172_s3 + $0x8] sm:$0xff] %vm95_vm2, %v84_v16 }

// kernel: _lambda_.13
= control target key start
LH: loop header
LB: loop body
LE: loop exit
PB: predicated region body
PF: predicated region fallthrough
CT: control target
= control target key end

     0   :  { %s825_s21 = smov 0   ;;  %s901_s0 = inlined_call_operand.vmem [shape: f32[8,4,16], index: 0, kind: input, shape index: {}]   ;;  %s902_s1 = inlined_call_operand.vmem [shape: f32[1,16], index: 1, kind: input, shape index: {}]   ;;  %s903_s2 = inlined_call_operand.vmem [shape: f32[1,16], index: 2, kind: input, shape index: {}]   ;;  %s904_s3 = inlined_call_operand.vmem [shape: bf16[16,48], index: 3, kind: input, shape index: {}]   ;;  %s905_s4 = inlined_call_operand.vmem [shape: bf16[16,16], index: 4, kind: input, shape index: {}]   ;;  %s906_s5 = inlined_call_operand.vmem [shape: f32[1,16], index: 5, kind: input, shape index: {}]   ;;  %s907_s6 = inlined_call_operand.vmem [shape: f32[8,4,16], index: 6, kind: output, shape index: {}]  }
   0x1 LB: > { %s678_s22 = sadd.s32 4294967295, %s780_s21   ;;  %p682_p0 = scmp.ge.s32.totalorder %s780_s21, 1  ;;  %s780_s21 = sphi %s825_s21, %s16_s21  }
   0x2   : > { %p211_p1 = scmp.lt.s32.totalorder %s780_s21, 9 }
   0x4   : > { %p212_p2 = pnand %p682_p0, %p211_p1 }
   0x5   : > { %p239_p3 = scmp.lt.s32.totalorder (!%p212_p2), %s678_s22, 7  ;;  %s784_s9 = smov (!%p212_p2), 120  }
   0x6   : > { %215 = sbr.rel (%p212_p2) target bundleno = 1670 (0x686), region = 44  ;;  %s785_s10 = smov (!%p212_p2), 112  }
   0x7   : > { %s786_s11 = smov (!%p212_p2), 104   ;;  %s787_s12 = smov (!%p212_p2), 88  }
   0x8   : > { %s788_s13 = smov (!%p212_p2), 96   ;;  %s789_s16 = smov (!%p212_p2), 8  }
   0xb   : > { %s909_s22 = smov (!%p239_p3, %s678_s22), 7  ;;  %vm249_vm0 = vcmask 125952   ;;  %v762_v7 = vld [vmem:[%s904_s3] sm:$0xff]   ;;  %v782_v8 = vmov 0.0   ;;  %vm783_vm1 = vmmov 0   ;;  %vm289_vm2 = vcmask 130048  }
   0xc   : > { %s683_s23 = sshll.u32 %s909_s22, 2  ;;  %710 = vmatprep.subr.bf16.mxu0 %v782_v8  ;;  %712 = vmatprep.mubr.msk.bf16.mxu0 %vm783_vm1, %v782_v8  ;;  %v685_v13 = vld [vmem:[%s902_s1] ss:$0 sm:$0xff]  ;;  %vm337_vm3 = vcmask 64512   ;;  %vm385_vm4 = vcmask 27648   ;;  %vm404_vm5 = vcmask 1041408  }
   0xd   : > { %s242_s26 = scalar_lea.vmem %s901_s0, %s683_s23  ;;  %711 = vmatpush3.bf16.msra.mxu0 %v762_v7  ;;  %716 = vmatprep.subr.bf16.mxu1 %v782_v8  ;;  %v686_v15 = vld [vmem:[%s903_s2] ss:$0 sm:$0xff]  ;;  %vm400_vm6 = vcmask 31744   ;;  %s246_s24 = scalar_lea.vmem %s907_s6, %s683_s23 }
   0xe   : > { %v841_v0 = vld [vmem:[%s242_s26] sm:$0xf]  ;;  %718 = vmatprep.mubr.msk.bf16.mxu1 %vm783_vm1, %v782_v8  ;;  %722 = vmatprep.subr.bf16.mxu0 %v782_v8 }
   0xf   : > { %v250_v1 = vsel %vm249_vm0, %v841_v0, 0.0  ;;  %v763_v63 = vld [vmem:[%s905_s4] sm:$0xff]  }
  0x10   : > { %251 = vadd.xlane.f32.xlu0 %v250_v1 }
  0x99   : > { %v252_v2 = vpop.xlane.xlu0 %251 }
  0x9a   : > { %v254_v3 = vmul.f32 0.0625, %v252_v2 }
  0x9c   : > { %v255_v4 = vsub.f32 %v841_v0, %v254_v3 }
  0x9e   : > { %v256_v5 = vmul.f32 %v255_v4, %v255_v4 }
  0xa0   : > { %v257_v6 = vsel %vm249_vm0, %v256_v5, 0.0 }
  0xa1   : > { %258 = vadd.xlane.f32.xlu0 %v257_v6 }
 0x12a   : > { %v259_v9 = vpop.xlane.xlu0 %258 }
 0x12b   : > { %v260_v10 = vmul.f32 0.0625, %v259_v9 }
 0x12d   : > { %v261_v11 = vadd.f32 1e-05, %v260_v10 }
 0x12f   : > { %764 = vrsqrt.f32 %v261_v11 }
 0x13c   : > { %v765_v12 = vpop.eup %764 }
 0x13d   : > { %v263_v14 = vmul.f32 %v765_v12, %v255_v4  ;;  %v693_v12 = vld [vmem:[%s906_s5] ss:$0 sm:$0xff] }
 0x13f   : > { %v271_v16 = vmul.f32 %v685_v13, %v263_v14 }
 0x141   : > { %v279_v17 = vadd.f32 %v686_v15, %v271_v16 }
 0x143   : > { %v280_v18 = vpack.c.bf16 %v279_v17, %v279_v17 }
 0x145   : > { %713 = vmatmul.mubr.msk.bf16.vlgmr.msra.gmra.mxu0 %vm289_vm2, %v280_v18 }
 0x146   : > { %724 = vmatprep.mubr.msk.bf16.mxu0 %vm783_vm1, %v782_v8 }
 0x205   : > { %v327_v19 = vpop.f32.mrf.mxu0 }
 0x206   : > { %v333_v20 = vpack.c.bf16 %v327_v19, %v327_v19 }
 0x207   : > { %v714_v21 = vpop.f32.mrf.mxu0 }
 0x208   : > { %448 = vrot.lane.b32.xlu0 %v333_v20, %s784_s9  ;;  %335 = vrot.lane.b32.xlu1 %v333_v20, %s785_s10 }
 0x209   : > { %v330_v22 = vpop.f32.mrf.mxu0 }
 0x20b   : > { %v715_v23 = vpop.f32.mrf.mxu0 }
 0x20c   : > { %450 = vrot.lane.b32.xlu1 %v333_v20, %s786_s11 }
 0x27a   : > { %v336_v24 = vpop.permute.xlu1 %335  ;;  %v449_v28 = vpop.permute.xlu0 %448 }
 0x27b   : > { %v342_v25 = vsel %vm337_vm3, %v336_v24, 0 }
 0x27c   : > { %717 = vmatpush3.bf16.xpose.msra.mxu1 %v342_v25 }
 0x27d   : > { %728 = vmatprep.subr.bf16.mxu1 %v782_v8 }
 0x27e   : > { %v451_v26 = vpop.permute.xlu1 %450 }
 0x27f   : > { %v456_v27 = vsel %vm337_vm3, %v451_v26, 0 }
 0x283   : > { %719 = vmatmul.mubr.msk.bf16.vlgmr.msra.gmra.mxu1 %vm337_vm3, %v333_v20 }
 0x284   : > { %729 = vmatpush3.bf16.xpose.msra.mxu1 %v456_v27  ;;  %730 = vmatprep.mubr.msk.bf16.mxu1 %vm783_vm1, %v782_v8 }
 0x285   : > { %740 = vmatprep.subr.bf16.mxu1 %v782_v8 }
 0x28b   : > { %731 = vmatmul.mubr.msk.bf16.vlgmr.msra.gmra.mxu1 %vm337_vm3, %v449_v28 }
 0x28c   : > { %742 = vmatprep.mubr.msk.bf16.mxu1 %vm783_vm1, %v782_v8  ;;  %741 = vmatpush3.bf16.msra.mxu1 %v763_v63 }
 0x343   : > { %v378_v29 = vpop.f32.mrf.mxu1 }
 0x344   : > { %v384_v30 = vmul.f32 0.35355338, %v378_v29 }
 0x345   : > { %v720_v31 = vpop.f32.mrf.mxu1 }
 0x346   : > { %v386_v32 = vsel %vm385_vm4, %v384_v30, -inf }
 0x347   : > { %387 = vmax.xlane.f32.xlu1 %v386_v32  ;;  %v381_v33 = vpop.f32.mrf.mxu1 }
 0x349   : > { %v721_v34 = vpop.f32.mrf.mxu1 }
 0x34b   : > { %v492_v35 = vpop.f32.mrf.mxu1 }
 0x34c   : > { %v498_v36 = vmul.f32 0.35355338, %v492_v35 }
 0x34d   : > { %v732_v37 = vpop.f32.mrf.mxu1 }
 0x34e   : > { %v499_v38 = vsel %vm385_vm4, %v498_v36, -inf }
 0x34f   : > { %500 = vmax.xlane.f32.xlu0 %v499_v38  ;;  %v495_v39 = vpop.f32.mrf.mxu1 }
 0x351   : > { %v733_v40 = vpop.f32.mrf.mxu1 }
 0x365   : > { %511 = vrot.lane.b32.xlu0 %v333_v20, %s787_s12 }
 0x3d0   : > { %v388_v41 = vpop.xlane.xlu1 %387 }
 0x3d1   : > { %v389_v42 = vsub.f32 %v384_v30, %v388_v41 }
 0x3d3   : > { %v390_v43 = vmul.f32 1.442695, %v389_v42 }
 0x3d5   : > { %766 = vpow2.f32 %v390_v43 }
 0x3d8   : > { %v501_v44 = vpop.xlane.xlu0 %500 }
 0x3d9   : > { %v502_v45 = vsub.f32 %v498_v36, %v501_v44 }
 0x3db   : > { %v503_v46 = vmul.f32 1.442695, %v502_v45 }
 0x3dc   : > { %v512_v57 = vpop.permute.xlu0 %511 }
 0x3dd   : > { %768 = vpow2.f32 %v503_v46  ;;  %v517_v59 = vsel %vm404_vm5, %v512_v57, 0 }
 0x3e2   : > { %v767_v47 = vpop.eup %766 }
 0x3e3   : > { %v392_v48 = vsel %vm385_vm4, %v767_v47, 0.0 }
 0x3e4   : > { %393 = vadd.xlane.f32.xlu1 %v392_v48 }
 0x3ea   : > { %v769_v49 = vpop.eup %768 }
 0x3eb   : > { %v505_v50 = vsel %vm385_vm4, %v769_v49, 0.0 }
 0x3ec   : > { %506 = vadd.xlane.f32.xlu1 %v505_v50 }
 0x3fd   : > { %398 = vrot.lane.b32.xlu1 %v333_v20, %s788_s13 }
 0x46d   : > { %v394_v51 = vpop.xlane.xlu1 %393 }
 0x46e   : > { %770 = vrcp.f32 %v394_v51 }
 0x475   : > { %v507_v52 = vpop.xlane.xlu1 %506 }
 0x476   : > { %772 = vrcp.f32 %v507_v52 }
 0x479   : > { %v399_v53 = vpop.permute.xlu1 %398 }
 0x47a   : > { %v406_v54 = vsel %vm404_vm5, %v399_v53, 0 }
 0x47b   : > { %v771_v55 = vpop.eup %770  ;;  %723 = vmatpush3.bf16.msra.mxu0 %v406_v54 }
 0x47c   : > { %734 = vmatprep.subr.bf16.mxu0 %v782_v8  ;;  %v396_v56 = vmul.f32 %v771_v55, %v767_v47 }
 0x47e   : > { %v397_v58 = vpack.c.bf16 %v396_v56, %v396_v56 }
 0x480   : > { %725 = vmatmul.mubr.msk.bf16.vlgmr.msra.gmra.mxu0 %vm400_vm6, %v397_v58 }
 0x481   : > { %735 = vmatpush3.bf16.msra.mxu0 %v517_v59  ;;  %736 = vmatprep.mubr.msk.bf16.mxu0 %vm783_vm1, %v782_v8 }
 0x483   : > { %v773_v60 = vpop.eup %772 }
 0x484   : > { %v509_v61 = vmul.f32 %v773_v60, %v769_v49 }
 0x486   : > { %v510_v62 = vpack.c.bf16 %v509_v61, %v509_v61 }
 0x488   : > { %737 = vmatmul.mubr.msk.bf16.vlgmr.msra.gmra.mxu0 %vm400_vm6, %v510_v62 }
 0x540   : > { %v442_v1 = vpop.f32.mrf.mxu0 }
 0x542   : > { %v726_v2 = vpop.f32.mrf.mxu0 }
 0x544   : > { %v445_v3 = vpop.f32.mrf.mxu0 }
 0x546   : > { %v727_v4 = vpop.f32.mrf.mxu0 }
 0x548   : > { %v553_v5 = vpop.f32.mrf.mxu0 }
 0x549   : > { %560 = vrot.lane.b32.xlu1 %v553_v5, %s789_s16 }
 0x54a   : > { %v738_v6 = vpop.f32.mrf.mxu0 }
 0x54c   : > { %v556_v7 = vpop.f32.mrf.mxu0 }
 0x54e   : > { %v739_v8 = vpop.f32.mrf.mxu0 }
 0x5bb   : > { %v561_v9 = vpop.permute.xlu1 %560 }
 0x5bc   : > { %v563_v10 = vsel %vm337_vm3, %v442_v1, %v561_v9 }
 0x5bd   : > { %v564_v11 = vpack.c.bf16 %v563_v10, %v563_v10 }
 0x5bf   : > { %743 = vmatmul.mubr.msk.bf16.vlgmr.msra.gmra.mxu1 %vm289_vm2, %v564_v11 }
 0x67f   : > { %v617_v13 = vpop.f32.mrf.mxu1 }
 0x680   : > { %v618_v14 = vadd.f32 %v693_v12, %v617_v13 }
 0x681   : > { %v744_v15 = vpop.f32.mrf.mxu1 }
 0x682   : > { %v623_v16 = vadd.f32 %v618_v14, %v841_v0 }
 0x683   : > { %v620_v17 = vpop.f32.mrf.mxu1 }
 0x684   : > { %624 = vst.msk [vmem:[%s246_s24] sm:$0xf] %vm249_vm0, %v623_v16 }
 0x685   : > { %v745_v18 = vpop.f32.mrf.mxu1 }
 0x686 PF: > { %s16_s21 = sadd.s32 1, %s780_s21  }
 0x687   : > { %p13_p4 = scmp.ge.s32.totalorder %s16_s21, 10  }
 0x689   :  { %15 = sbr.rel (!%p13_p4) target bundleno = 1 (0x1), region = 74 }

// kernel: _lambda_.15
= control target key start
LH: loop header
LB: loop body
LE: loop exit
PB: predicated region body
PF: predicated region fallthrough
CT: control target
= control target key end

     0   :  { %vm29_vm0 = vcmask 125952   ;;  %v551_v56 = vmov 0.0   ;;  %vm552_vm1 = vmmov 0   ;;  %vm195_vm2 = vcmask 1041409   ;;  %s759_s0 = inlined_call_operand.vmem [shape: f32[8,4,16], index: 0, kind: input, shape index: {}]   ;;  %s760_s3 = inlined_call_operand.vmem [shape: bf16[4,16,32], index: 3, kind: input, shape index: {}]   ;;  %s761_s1 = inlined_call_operand.vmem [shape: f32[1,1,16], index: 1, kind: input, shape index: {}]   ;;  %s762_s2 = inlined_call_operand.vmem [shape: f32[1,1,16], index: 2, kind: input, shape index: {}]   ;;  %s763_s4 = inlined_call_operand.vmem [shape: f32[1,32], index: 4, kind: input, shape index: {}]   ;;  %s764_s5 = inlined_call_operand.vmem [shape: f32[8,32], index: 5, kind: output, shape index: {}]  }
   0x1   :  { %v21_v0 = vld [vmem:[%s759_s0] sm:$0xf]  ;;  %v23_v1 = vld [vmem:[%s759_s0 + $0x8] sm:$0xf]  ;;  %v22_v2 = vld [vmem:[%s759_s0 + $0x4] sm:$0xf]  ;;  %505 = vmatprep.subr.bf16.mxu0 %v551_v56  ;;  %511 = vmatprep.subr.bf16.mxu1 %v551_v56 }
   0x2   :  { %v30_v3 = vsel %vm29_vm0, %v21_v0, 0.0  ;;  %v36_v4 = vsel %vm29_vm0, %v23_v1, 0.0  ;;  %v24_v5 = vld [vmem:[%s759_s0 + $0xc] sm:$0xf]  ;;  %v33_v6 = vsel %vm29_vm0, %v22_v2, 0.0  ;;  %v532_v58 = vld [vmem:[%s760_s3] sm:$0xff]   ;;  %507 = vmatprep.mubr.msk.bf16.mxu0 %vm552_vm1, %v551_v56  ;;  %513 = vmatprep.mubr.msk.bf16.mxu1 %vm552_vm1, %v551_v56 }
   0x3   :  { %31 = vadd.xlane.f32.xlu0 %v30_v3  ;;  %37 = vadd.xlane.f32.xlu1 %v36_v4  ;;  %v39_v7 = vsel %vm29_vm0, %v24_v5, 0.0  ;;  %v25_v8 = vld [vmem:[%s759_s0 + $0x10] sm:$0xf]  ;;  %v26_v9 = vld [vmem:[%s759_s0 + $0x14] sm:$0xf]  ;;  %v531_v57 = vld [vmem:[%s760_s3 + $0x8] sm:$0xff]  }
   0x4   :  { %v42_v10 = vsel %vm29_vm0, %v25_v8, 0.0  ;;  %v45_v11 = vsel %vm29_vm0, %v26_v9, 0.0  ;;  %v27_v12 = vld [vmem:[%s759_s0 + $0x18] sm:$0xf]  ;;  %v28_v13 = vld [vmem:[%s759_s0 + $0x1c] sm:$0xf]  ;;  %506 = vmatpush3.bf16.msra.mxu0 %v531_v57  ;;  %512 = vmatpush3.bf16.msra.mxu1 %v532_v58 }
   0x5   :  { %v48_v14 = vsel %vm29_vm0, %v27_v12, 0.0  ;;  %v51_v15 = vsel %vm29_vm0, %v28_v13, 0.0  ;;  %517 = vmatprep.subr.bf16.mxu0 %v551_v56  ;;  %523 = vmatprep.subr.bf16.mxu1 %v551_v56  ;;  %vm198_vm3 = vcmask 1042434   ;;  %vm201_vm4 = vcmask 1043459  }
   0x6   :  { %vm204_vm5 = vcmask 1044484   ;;  %vm207_vm6 = vcmask 1045509   ;;  %vm210_vm7 = vcmask 1046534   ;;  %vm213_vm8 = vcmask 1047559  }
   0x7   :  { %34 = vadd.xlane.f32.xlu0 %v33_v6  ;;  %40 = vadd.xlane.f32.xlu1 %v39_v7  ;;  %vm222_vm9 = vcmask 130048   ;;  %vm474_vm10 = vcmask 261120  }
   0xb   :  { %43 = vadd.xlane.f32.xlu0 %v42_v10  ;;  %46 = vadd.xlane.f32.xlu1 %v45_v11 }
   0xf   :  { %49 = vadd.xlane.f32.xlu0 %v48_v14  ;;  %52 = vadd.xlane.f32.xlu1 %v51_v15 }
  0x8c   :  { %v32_v16 = vpop.xlane.xlu0 %31  ;;  %v38_v17 = vpop.xlane.xlu1 %37 }
  0x8d   :  { %v55_v18 = vmul.f32 0.0625, %v32_v16  ;;  %v57_v19 = vmul.f32 0.0625, %v38_v17 }
  0x8f   :  { %v615_v20 = vsub.f32 %v21_v0, %v55_v18  ;;  %v617_v21 = vsub.f32 %v23_v1, %v57_v19  ;;  %v480_v19 = vld [vmem:[%s761_s1] ss:$0 sm:$0xff] }
  0x90   :  { %v35_v22 = vpop.xlane.xlu0 %34  ;;  %v41_v23 = vpop.xlane.xlu1 %40 }
  0x91   :  { %v56_v24 = vmul.f32 0.0625, %v35_v22  ;;  %v58_v25 = vmul.f32 0.0625, %v41_v23  ;;  %v71_v26 = vmul.f32 %v615_v20, %v615_v20  ;;  %v73_v27 = vmul.f32 %v617_v21, %v617_v21 }
  0x93   :  { %v623_v28 = vsub.f32 %v22_v2, %v56_v24  ;;  %v625_v29 = vsub.f32 %v24_v5, %v58_v25  ;;  %v79_v30 = vsel %vm29_vm0, %v71_v26, 0.0  ;;  %v85_v33 = vsel %vm29_vm0, %v73_v27, 0.0  ;;  %v676_v24 = vld [vmem:[%s762_s2] ss:$0 sm:$0xff] }
  0x94   :  { %80 = vadd.xlane.f32.xlu0 %v79_v30  ;;  %v44_v31 = vpop.xlane.xlu0 %43  ;;  %v47_v32 = vpop.xlane.xlu1 %46 }
  0x95   :  { %v59_v34 = vmul.f32 0.0625, %v44_v31  ;;  %v60_v35 = vmul.f32 0.0625, %v47_v32  ;;  %v72_v36 = vmul.f32 %v623_v28, %v623_v28  ;;  %v74_v37 = vmul.f32 %v625_v29, %v625_v29 }
  0x97   :  { %v633_v38 = vsub.f32 %v25_v8, %v59_v34  ;;  %v635_v39 = vsub.f32 %v26_v9, %v60_v35  ;;  %v82_v40 = vsel %vm29_vm0, %v72_v36, 0.0  ;;  %v88_v43 = vsel %vm29_vm0, %v74_v37, 0.0 }
  0x98   :  { %86 = vadd.xlane.f32.xlu0 %v85_v33  ;;  %83 = vadd.xlane.f32.xlu1 %v82_v40  ;;  %v50_v41 = vpop.xlane.xlu0 %49  ;;  %v53_v42 = vpop.xlane.xlu1 %52 }
  0x99   :  { %v61_v44 = vmul.f32 0.0625, %v50_v41  ;;  %v62_v45 = vmul.f32 0.0625, %v53_v42  ;;  %v75_v46 = vmul.f32 %v633_v38, %v633_v38  ;;  %v76_v47 = vmul.f32 %v635_v39, %v635_v39 }
  0x9b   :  { %v643_v48 = vsub.f32 %v27_v12, %v61_v44  ;;  %v645_v49 = vsub.f32 %v28_v13, %v62_v45  ;;  %v91_v50 = vsel %vm29_vm0, %v75_v46, 0.0  ;;  %v94_v51 = vsel %vm29_vm0, %v76_v47, 0.0 }
  0x9c   :  { %89 = vadd.xlane.f32.xlu1 %v88_v43  ;;  %92 = vadd.xlane.f32.xlu0 %v91_v50 }
  0x9d   :  { %v77_v52 = vmul.f32 %v643_v48, %v643_v48  ;;  %v78_v53 = vmul.f32 %v645_v49, %v645_v49 }
  0x9f   :  { %v97_v54 = vsel %vm29_vm0, %v77_v52, 0.0  ;;  %v100_v55 = vsel %vm29_vm0, %v78_v53, 0.0 }
  0xa0   :  { %95 = vadd.xlane.f32.xlu1 %v94_v51  ;;  %98 = vadd.xlane.f32.xlu0 %v97_v54 }
  0xa4   :  { %101 = vadd.xlane.f32.xlu1 %v100_v55 }
 0x11d   :  { %v81_v59 = vpop.xlane.xlu0 %80 }
 0x11e   :  { %v103_v60 = vmul.f32 0.0625, %v81_v59 }
 0x120   :  { %v111_v61 = vadd.f32 1e-05, %v103_v60 }
 0x121   :  { %v84_v62 = vpop.xlane.xlu1 %83  ;;  %v87_v63 = vpop.xlane.xlu0 %86 }
 0x122   :  { %535 = vrsqrt.f32 %v111_v61  ;;  %v104_v0 = vmul.f32 0.0625, %v84_v62  ;;  %v105_v1 = vmul.f32 0.0625, %v87_v63 }
 0x124   :  { %v112_v2 = vadd.f32 1e-05, %v104_v0  ;;  %v113_v3 = vadd.f32 1e-05, %v105_v1 }
 0x125   :  { %v90_v4 = vpop.xlane.xlu1 %89  ;;  %v93_v5 = vpop.xlane.xlu0 %92 }
 0x126   :  { %537 = vrsqrt.f32 %v112_v2  ;;  %v106_v6 = vmul.f32 0.0625, %v90_v4  ;;  %v107_v7 = vmul.f32 0.0625, %v93_v5 }
 0x127   :  { %539 = vrsqrt.f32 %v113_v3 }
 0x128   :  { %v114_v8 = vadd.f32 1e-05, %v106_v6  ;;  %v115_v9 = vadd.f32 1e-05, %v107_v7 }
 0x129   :  { %v96_v10 = vpop.xlane.xlu1 %95  ;;  %v99_v11 = vpop.xlane.xlu0 %98 }
 0x12a   :  { %541 = vrsqrt.f32 %v114_v8  ;;  %v108_v12 = vmul.f32 0.0625, %v96_v10  ;;  %v109_v13 = vmul.f32 0.0625, %v99_v11 }
 0x12b   :  { %543 = vrsqrt.f32 %v115_v9 }
 0x12c   :  { %v116_v14 = vadd.f32 1e-05, %v108_v12  ;;  %v117_v15 = vadd.f32 1e-05, %v109_v13 }
 0x12d   :  { %v102_v16 = vpop.xlane.xlu1 %101 }
 0x12e   :  { %545 = vrsqrt.f32 %v116_v14  ;;  %v110_v17 = vmul.f32 0.0625, %v102_v16 }
 0x12f   :  { %v536_v18 = vpop.eup %535  ;;  %547 = vrsqrt.f32 %v117_v15 }
 0x130   :  { %v127_v22 = vmul.f32 %v536_v18, %v615_v20  ;;  %v118_v23 = vadd.f32 1e-05, %v110_v17 }
 0x132   :  { %v142_v25 = vmul.f32 %v480_v19, %v127_v22  ;;  %549 = vrsqrt.f32 %v118_v23 }
 0x133   :  { %v538_v26 = vpop.eup %537 }
 0x134   :  { %v540_v27 = vpop.eup %539  ;;  %v157_v30 = vadd.f32 %v676_v24, %v142_v25  ;;  %v128_v31 = vmul.f32 %v538_v26, %v623_v28 }
 0x135   :  { %v129_v32 = vmul.f32 %v540_v27, %v617_v21 }
 0x136   :  { %v165_v33 = vpack.c.bf16 %v157_v30, %v157_v30  ;;  %v143_v34 = vmul.f32 %v480_v19, %v128_v31 }
 0x137   :  { %v542_v35 = vpop.eup %541  ;;  %v144_v20 = vmul.f32 %v480_v19, %v129_v32 }
 0x138   :  { %v544_v36 = vpop.eup %543  ;;  %v681_v37 = vunpack.c.l.b16 %v165_v33  ;;  %v158_v40 = vadd.f32 %v676_v24, %v143_v34  ;;  %v130_v41 = vmul.f32 %v542_v35, %v625_v29 }
 0x139   :  { %v159_v42 = vadd.f32 %v676_v24, %v144_v20  ;;  %v131_v43 = vmul.f32 %v544_v36, %v633_v38 }
 0x13a   :  { %v166_v44 = vpack.c.bf16 %v158_v40, %v158_v40  ;;  %v145_v45 = vmul.f32 %v480_v19, %v130_v41  ;;  %v333_v50 = vrot.slane %v681_v37, 2  ;;  %v194_v55 = vrot.slane %v681_v37, 1 }
 0x13b   :  { %v546_v21 = vpop.eup %545  ;;  %v167_v28 = vpack.c.bf16 %v159_v42, %v159_v42  ;;  %v146_v46 = vmul.f32 %v480_v19, %v131_v43  ;;  %v401_v41 = vrot.slane %v681_v37, 3 }
 0x13c   :  { %v548_v47 = vpop.eup %547  ;;  %v688_v51 = vunpack.c.l.b16 %v166_v44  ;;  %v160_v29 = vadd.f32 %v676_v24, %v145_v45  ;;  %v132_v52 = vmul.f32 %v546_v21, %v635_v39 }
 0x13d   :  { %v692_v53 = vunpack.c.l.b16 %v167_v28  ;;  %v161_v38 = vadd.f32 %v676_v24, %v146_v46  ;;  %v133_v54 = vmul.f32 %v548_v47, %v643_v48 }
 0x13e   :  { %v334_v57 = vrot.slane %v688_v51, 1  ;;  %v402_v58 = vrot.slane %v688_v51, 2  ;;  %v168_v59 = vpack.c.bf16 %v160_v29, %v160_v29  ;;  %v147_v60 = vmul.f32 %v480_v19, %v132_v52  ;;  %v533_v29 = vld [vmem:[%s760_s3 + $0x10] sm:$0xff]   ;;  %v534_v52 = vld [vmem:[%s760_s3 + $0x18] sm:$0xff]  }
 0x13f   :  { %v550_v61 = vpop.eup %549  ;;  %v169_v62 = vpack.c.bf16 %v161_v38, %v161_v38  ;;  %v148_v63 = vmul.f32 %v480_v19, %v133_v54  ;;  %v196_v39 = vsel %vm195_vm2, %v688_v51, %v194_v55  ;;  %v197_v0 = vrot.slane %v692_v53, 7 }
 0x140   :  { %v189_v1 = vunpack.c.l.b16 %v168_v59  ;;  %v162_v48 = vadd.f32 %v676_v24, %v147_v60  ;;  %v134_v2 = vmul.f32 %v550_v61, %v645_v49  ;;  %v266_v3 = vrot.slane %v688_v51, 7 }
 0x141   :  { %v190_v4 = vunpack.c.l.b16 %v169_v62  ;;  %v163_v5 = vadd.f32 %v676_v24, %v148_v63  ;;  %v199_v6 = vsel %vm198_vm3, %v197_v0, %v196_v39  ;;  %v268_v7 = vrot.slane %v692_v53, 6 }
 0x142   :  { %v170_v8 = vpack.c.bf16 %v162_v48, %v162_v48  ;;  %v149_v9 = vmul.f32 %v480_v19, %v134_v2  ;;  %v200_v10 = vrot.slane %v189_v1, 6  ;;  %v267_v11 = vsel %vm195_vm2, %v266_v3, %v681_v37 }
 0x143   :  { %v171_v12 = vpack.c.bf16 %v163_v5, %v163_v5  ;;  %v203_v13 = vrot.slane %v190_v4, 5  ;;  %v269_v14 = vsel %vm198_vm3, %v268_v7, %v267_v11  ;;  %v270_v49 = vrot.slane %v189_v1, 5 }
 0x144   :  { %v191_v15 = vunpack.c.l.b16 %v170_v8  ;;  %v164_v16 = vadd.f32 %v676_v24, %v149_v9  ;;  %v202_v17 = vsel %vm201_vm4, %v200_v10, %v199_v6  ;;  %v272_v18 = vrot.slane %v190_v4, 4 }
 0x145   :  { %v192_v22 = vunpack.c.l.b16 %v171_v12  ;;  %v205_v23 = vsel %vm204_vm5, %v203_v13, %v202_v17  ;;  %v271_v19 = vsel %vm201_vm4, %v270_v49, %v269_v14  ;;  %v335_v25 = vsel %vm195_vm2, %v334_v57, %v333_v50 }
 0x146   :  { %v172_v26 = vpack.c.bf16 %v164_v16, %v164_v16  ;;  %v206_v27 = vrot.slane %v191_v15, 4  ;;  %v273_v30 = vsel %vm204_vm5, %v272_v18, %v271_v19  ;;  %v274_v31 = vrot.slane %v191_v15, 3  ;;  %v496_v16 = vld [vmem:[%s763_s4] ss:$0 sm:$0xff] }
 0x147   :  { %v209_v32 = vrot.slane %v192_v22, 3  ;;  %v276_v33 = vrot.slane %v192_v22, 2  ;;  %v336_v24 = vsel %vm198_vm3, %v692_v53, %v335_v25  ;;  %v337_v34 = vrot.slane %v189_v1, 7 }
 0x148   :  { %v193_v35 = vunpack.c.l.b16 %v172_v26  ;;  %v208_v20 = vsel %vm207_vm6, %v206_v27, %v205_v23  ;;  %v275_v36 = vsel %vm207_vm6, %v274_v31, %v273_v30  ;;  %v339_v40 = vrot.slane %v190_v4, 6 }
 0x149   :  { %v338_v42 = vsel %vm201_vm4, %v337_v34, %v336_v24  ;;  %v341_v43 = vrot.slane %v191_v15, 5  ;;  %v211_v44 = vsel %vm210_vm7, %v209_v32, %v208_v20  ;;  %v277_v28 = vsel %vm210_vm7, %v276_v33, %v275_v36 }
 0x14a   :  { %v212_v45 = vrot.slane %v193_v35, 2  ;;  %v278_v21 = vrot.slane %v193_v35, 1  ;;  %v340_v46 = vsel %vm204_vm5, %v339_v40, %v338_v42  ;;  %v403_v47 = vsel %vm195_vm2, %v402_v58, %v401_v41 }
 0x14b   :  { %v404_v50 = vrot.slane %v692_v53, 1  ;;  %v343_v38 = vrot.slane %v192_v22, 4  ;;  %v407_v54 = vrot.slane %v190_v4, 7  ;;  %v342_v58 = vsel %vm207_vm6, %v341_v43, %v340_v46 }
 0x14c   :  { %v214_v51 = vsel %vm213_vm8, %v212_v45, %v211_v44  ;;  %v279_v37 = vsel %vm213_vm8, %v278_v21, %v277_v28  ;;  %v345_v59 = vrot.slane %v193_v35, 3  ;;  %v409_v61 = vrot.slane %v191_v15, 6 }
 0x14d   :  { %v215_v55 = vpack.c.b16 %v214_v51, %v214_v51  ;;  %v280_v57 = vpack.c.b16 %v279_v37, %v279_v37  ;;  %v405_v53 = vsel %vm198_vm3, %v404_v50, %v403_v47  ;;  %v411_v62 = vrot.slane %v192_v22, 5 }
 0x14e   :  { %v406_v60 = vsel %vm201_vm4, %v189_v1, %v405_v53  ;;  %v413_v39 = vrot.slane %v193_v35, 4  ;;  %v344_v1 = vsel %vm210_vm7, %v343_v38, %v342_v58 }
 0x14f   :  { %508 = vmatmul.mubr.msk.bf16.vlgmr.msra.gmra.mxu0 %vm222_vm9, %v215_v55  ;;  %514 = vmatmul.mubr.msk.bf16.vlgmr.msra.gmra.mxu1 %vm222_vm9, %v280_v57  ;;  %v408_v63 = vsel %vm204_vm5, %v407_v54, %v406_v60  ;;  %v346_v2 = vsel %vm213_vm8, %v345_v59, %v344_v1 }
 0x150   :  { %518 = vmatpush3.bf16.msra.mxu0 %v533_v29  ;;  %524 = vmatpush3.bf16.msra.mxu1 %v534_v52  ;;  %v410_v0 = vsel %vm207_vm6, %v409_v61, %v408_v63  ;;  %v347_v4 = vpack.c.b16 %v346_v2, %v346_v2 }
 0x151   :  { %519 = vmatprep.mubr.msk.bf16.mxu0 %vm552_vm1, %v551_v56  ;;  %525 = vmatprep.mubr.msk.bf16.mxu1 %vm552_vm1, %v551_v56  ;;  %v412_v48 = vsel %vm210_vm7, %v411_v62, %v410_v0 }
 0x152   :  { %v414_v3 = vsel %vm213_vm8, %v413_v39, %v412_v48 }
 0x153   :  { %v415_v5 = vpack.c.b16 %v414_v3, %v414_v3 }
 0x157   :  { %520 = vmatmul.mubr.msk.bf16.vlgmr.msra.gmra.mxu0 %vm222_vm9, %v347_v4  ;;  %526 = vmatmul.mubr.msk.bf16.vlgmr.msra.gmra.mxu1 %vm222_vm9, %v415_v5 }
 0x20f   :  { %v260_v6 = vpop.f32.mrf.mxu0  ;;  %v324_v7 = vpop.f32.mrf.mxu1 }
 0x210   :  { %v325_v13 = vadd.f32 %v324_v7, %v260_v6 }
 0x211   :  { %v509_v8 = vpop.f32.mrf.mxu0  ;;  %v515_v9 = vpop.f32.mrf.mxu1 }
 0x213   :  { %v263_v10 = vpop.f32.mrf.mxu0  ;;  %v327_v56 = vpop.f32.mrf.mxu1 }
 0x215   :  { %v510_v11 = vpop.f32.mrf.mxu0  ;;  %v516_v12 = vpop.f32.mrf.mxu1 }
 0x217   :  { %v391_v14 = vpop.f32.mrf.mxu0  ;;  %v459_v49 = vpop.f32.mrf.mxu1 }
 0x218   :  { %v397_v15 = vadd.f32 %v391_v14, %v325_v13 }
 0x219   :  { %v521_v17 = vpop.f32.mrf.mxu0  ;;  %v527_v18 = vpop.f32.mrf.mxu1 }
 0x21a   :  { %v465_v22 = vadd.f32 %v459_v49, %v397_v15 }
 0x21b   :  { %v394_v23 = vpop.f32.mrf.mxu0  ;;  %v462_v19 = vpop.f32.mrf.mxu1 }
 0x21c   :  { %v473_v25 = vadd.f32 %v496_v16, %v465_v22 }
 0x21d   :  { %v522_v26 = vpop.f32.mrf.mxu0  ;;  %v528_v27 = vpop.f32.mrf.mxu1 }
 0x21e   :  { %475 = vst.msk [vmem:[%s764_s5] sm:$0xff] %vm474_vm10, %v473_v25 }

// kernel: _lambda_.14
= control target key start
LH: loop header
LB: loop body
LE: loop exit
PB: predicated region body
PF: predicated region fallthrough
CT: control target
= control target key end

     0   :  { %vm31_vm0 = vcmask 130048   ;;  %vm240_vm1 = vcmask 523264   ;;  %s494_s0 = inlined_call_operand.vmem [shape: f32[32,16], index: 0, kind: input, shape index: {}]   ;;  %s495_s3 = inlined_call_operand.vmem [shape: bf16[16,64], index: 3, kind: input, shape index: {}]   ;;  %s496_s1 = inlined_call_operand.vmem [shape: f32[1,16], index: 1, kind: input, shape index: {}]   ;;  %s497_s2 = inlined_call_operand.vmem [shape: f32[1,16], index: 2, kind: input, shape index: {}]   ;;  %s498_s5 = inlined_call_operand.vmem [shape: bf16[64,16], index: 5, kind: input, shape index: {}]   ;;  %s499_s4 = inlined_call_operand.vmem [shape: f32[1,64], index: 4, kind: input, shape index: {}]   ;;  %s500_s6 = inlined_call_operand.vmem [shape: f32[1,16], index: 6, kind: input, shape index: {}]   ;;  %s501_s7 = inlined_call_operand.vmem [shape: f32[32,16], index: 7, kind: output, shape index: {}]  }
   0x1   :  { %v412_v0 = vld [vmem:[%s494_s0] sm:$0xff]  ;;  %v417_v1 = vld [vmem:[%s494_s0 + $0x10] sm:$0xff]  ;;  %v422_v2 = vld [vmem:[%s494_s0 + $0x8] sm:$0xff] }
   0x2   :  { %v32_v3 = vsel %vm31_vm0, %v412_v0, 0.0  ;;  %v38_v4 = vsel %vm31_vm0, %v417_v1, 0.0  ;;  %v431_v5 = vld [vmem:[%s494_s0 + $0x18] sm:$0xff]  ;;  %v35_v6 = vsel %vm31_vm0, %v422_v2, 0.0  ;;  %v348_v28 = vld [vmem:[%s495_s3] sm:$0xff]   ;;  %v350_v62 = vld [vmem:[%s498_s5 + $0x10] sm:$0xff]  }
   0x3   :  { %33 = vadd.xlane.f32.xlu0 %v32_v3  ;;  %39 = vadd.xlane.f32.xlu1 %v38_v4  ;;  %v41_v7 = vsel %vm31_vm0, %v431_v5, 0.0  ;;  %v308_v43 = vld [vmem:[%s496_s1] ss:$0 sm:$0xff]  ;;  %v349_v61 = vld [vmem:[%s498_s5 + $0x18] sm:$0xff]   ;;  %v351_v63 = vld [vmem:[%s498_s5 + $0x8] sm:$0xff]  }
   0x4   :  { %330 = vmatprep.subr.bf16.mxu0 %v348_v28  ;;  %v309_v48 = vld [vmem:[%s497_s2] ss:$0 sm:$0xff]  ;;  %336 = vmatprep.subr.bf16.mxu1 %v349_v61 }
   0x5   :  { %331 = vmatpush3.bf16.msra.mxu0 %v348_v28  ;;  %337 = vmatpush3.bf16.msra.mxu1 %v349_v61  ;;  %v352_v3 = vld [vmem:[%s498_s5] sm:$0xff]  }
   0x6   :  { %338 = vmatprep.subr.bf16.mxu1 %v350_v62  ;;  %v310_v4 = vld [vmem:[%s499_s4] ss:$0 sm:$0xff] }
   0x7   :  { %36 = vadd.xlane.f32.xlu0 %v35_v6  ;;  %42 = vadd.xlane.f32.xlu1 %v41_v7 }
   0x9   :  { %339 = vmatpush3.bf16.msra.mxu1 %v350_v62 }
   0xa   :  { %340 = vmatprep.subr.bf16.mxu1 %v351_v63 }
   0xd   :  { %341 = vmatpush3.bf16.msra.mxu1 %v351_v63 }
   0xe   :  { %342 = vmatprep.subr.bf16.mxu1 %v352_v3 }
  0x11   :  { %343 = vmatpush3.bf16.msra.mxu1 %v352_v3 }
  0x8c   :  { %v34_v8 = vpop.xlane.xlu0 %33  ;;  %v40_v9 = vpop.xlane.xlu1 %39 }
  0x8d   :  { %v45_v10 = vmul.f32 0.0625, %v34_v8  ;;  %v47_v11 = vmul.f32 0.0625, %v40_v9 }
  0x8f   :  { %v49_v12 = vsub.f32 %v412_v0, %v45_v10  ;;  %v51_v13 = vsub.f32 %v417_v1, %v47_v11 }
  0x90   :  { %v37_v14 = vpop.xlane.xlu0 %36  ;;  %v43_v15 = vpop.xlane.xlu1 %42 }
  0x91   :  { %v46_v16 = vmul.f32 0.0625, %v37_v14  ;;  %v48_v17 = vmul.f32 0.0625, %v43_v15  ;;  %v53_v18 = vmul.f32 %v49_v12, %v49_v12  ;;  %v55_v19 = vmul.f32 %v51_v13, %v51_v13 }
  0x93   :  { %v50_v20 = vsub.f32 %v422_v2, %v46_v16  ;;  %v52_v21 = vsub.f32 %v431_v5, %v48_v17  ;;  %v57_v22 = vsel %vm31_vm0, %v53_v18, 0.0  ;;  %v63_v23 = vsel %vm31_vm0, %v55_v19, 0.0 }
  0x94   :  { %58 = vadd.xlane.f32.xlu0 %v57_v22 }
  0x95   :  { %v54_v24 = vmul.f32 %v50_v20, %v50_v20  ;;  %v56_v25 = vmul.f32 %v52_v21, %v52_v21 }
  0x97   :  { %v60_v26 = vsel %vm31_vm0, %v54_v24, 0.0  ;;  %v66_v27 = vsel %vm31_vm0, %v56_v25, 0.0 }
  0x98   :  { %64 = vadd.xlane.f32.xlu0 %v63_v23  ;;  %61 = vadd.xlane.f32.xlu1 %v60_v26 }
  0x9c   :  { %67 = vadd.xlane.f32.xlu1 %v66_v27 }
 0x11d   :  { %v59_v29 = vpop.xlane.xlu0 %58 }
 0x11e   :  { %v69_v30 = vmul.f32 0.0625, %v59_v29 }
 0x120   :  { %v73_v31 = vadd.f32 1e-05, %v69_v30 }
 0x121   :  { %v62_v32 = vpop.xlane.xlu1 %61  ;;  %v65_v33 = vpop.xlane.xlu0 %64 }
 0x122   :  { %353 = vrsqrt.f32 %v73_v31  ;;  %v70_v34 = vmul.f32 0.0625, %v62_v32  ;;  %v71_v35 = vmul.f32 0.0625, %v65_v33 }
 0x124   :  { %v74_v36 = vadd.f32 1e-05, %v70_v34  ;;  %v75_v37 = vadd.f32 1e-05, %v71_v35 }
 0x125   :  { %v68_v38 = vpop.xlane.xlu1 %67 }
 0x126   :  { %355 = vrsqrt.f32 %v74_v36  ;;  %v72_v39 = vmul.f32 0.0625, %v68_v38  ;;  %v314_v36 = vld [vmem:[%s500_s6] ss:$0 sm:$0xff] }
 0x127   :  { %357 = vrsqrt.f32 %v75_v37 }
 0x128   :  { %v76_v40 = vadd.f32 1e-05, %v72_v39 }
 0x12a   :  { %359 = vrsqrt.f32 %v76_v40 }
 0x12f   :  { %v354_v41 = vpop.eup %353 }
 0x130   :  { %v81_v42 = vmul.f32 %v354_v41, %v49_v12 }
 0x132   :  { %v92_v47 = vmul.f32 %v308_v43, %v81_v42 }
 0x133   :  { %v356_v44 = vpop.eup %355 }
 0x134   :  { %v358_v45 = vpop.eup %357  ;;  %v82_v46 = vmul.f32 %v356_v44, %v50_v20  ;;  %v103_v52 = vadd.f32 %v309_v48, %v92_v47 }
 0x135   :  { %v83_v49 = vmul.f32 %v358_v45, %v51_v13 }
 0x136   :  { %v93_v50 = vmul.f32 %v308_v43, %v82_v46 }
 0x137   :  { %v360_v51 = vpop.eup %359  ;;  %v94_v55 = vmul.f32 %v308_v43, %v83_v49 }
 0x138   :  { %v104_v53 = vadd.f32 %v309_v48, %v93_v50  ;;  %v84_v54 = vmul.f32 %v360_v51, %v52_v21 }
 0x139   :  { %v105_v58 = vadd.f32 %v309_v48, %v94_v55 }
 0x13a   :  { %v107_v56 = vpack.c.bf16 %v104_v53, %v103_v52  ;;  %v95_v57 = vmul.f32 %v308_v43, %v84_v54 }
 0x13c   :  { %332 = vmatprep.mubr.msk.bf16.mxu0 %vm31_vm0, %v107_v56  ;;  %v106_v59 = vadd.f32 %v309_v48, %v95_v57 }
 0x13e   :  { %v108_v60 = vpack.c.bf16 %v106_v59, %v105_v58 }
 0x140   :  { %333 = vmatmul.mubr.msk.bf16.vlgmr.msra.gmra.mxu0 %vm31_vm0, %v108_v60 }
 0x200   :  { %v334_v6 = vpop.f32.mrf.mxu0 }
 0x201   :  { %v173_v7 = vadd.f32 %v334_v6, %v310_v4 }
 0x202   :  { %v164_v8 = vpop.f32.mrf.mxu0 }
 0x203   :  { %v165_v9 = vadd.f32 %v310_v4, %v164_v8  ;;  %v185_v10 = vmul.f32 0.70710677, %v173_v7  ;;  %v181_v29 = vmul.f32 0.5, %v173_v7 }
 0x204   :  { %v335_v11 = vpop.f32.mrf.mxu0 }
 0x205   :  { %v183_v12 = vmul.f32 0.70710677, %v165_v9  ;;  %v176_v13 = vadd.f32 %v335_v11, %v310_v4  ;;  %v179_v26 = vmul.f32 0.5, %v165_v9 }
 0x206   :  { %v167_v14 = vpop.f32.mrf.mxu0 }
 0x207   :  { %361 = verf.f32 %v183_v12  ;;  %v186_v15 = vmul.f32 0.70710677, %v176_v13  ;;  %v168_v16 = vadd.f32 %v310_v4, %v167_v14  ;;  %v182_v25 = vmul.f32 0.5, %v176_v13 }
 0x208   :  { %363 = verf.f32 %v185_v10 }
 0x209   :  { %365 = verf.f32 %v186_v15  ;;  %v184_v17 = vmul.f32 0.70710677, %v168_v16  ;;  %v180_v27 = vmul.f32 0.5, %v168_v16 }
 0x20b   :  { %367 = verf.f32 %v184_v17 }
 0x214   :  { %v362_v18 = vpop.eup %361 }
 0x215   :  { %v364_v19 = vpop.eup %363  ;;  %v191_v22 = vadd.f32 1.0, %v362_v18 }
 0x216   :  { %v366_v20 = vpop.eup %365  ;;  %v193_v24 = vadd.f32 1.0, %v364_v19 }
 0x217   :  { %v194_v21 = vadd.f32 1.0, %v366_v20  ;;  %v195_v31 = vmul.f32 %v191_v22, %v179_v26 }
 0x218   :  { %v368_v23 = vpop.eup %367  ;;  %v197_v33 = vmul.f32 %v193_v24, %v181_v29 }
 0x219   :  { %v192_v28 = vadd.f32 1.0, %v368_v23  ;;  %v198_v30 = vmul.f32 %v194_v21, %v182_v25 }
 0x21b   :  { %v196_v32 = vmul.f32 %v192_v28, %v180_v27  ;;  %v200_v35 = vpack.c.bf16 %v198_v30, %v197_v33 }
 0x21d   :  { %v199_v34 = vpack.c.bf16 %v196_v32, %v195_v31 }
 0x21f   :  { %344 = vmatprep.mubr.msk.bf16.mxu1 %vm240_vm1, %v199_v34 }
 0x220   :  { %345 = vmatmul.mubr.msk.bf16.vlgmr.msra.gmra.mxu1 %vm240_vm1, %v200_v35 }
 0x2e0   :  { %v346_v37 = vpop.f32.mrf.mxu1 }
 0x2e1   :  { %v290_v38 = vadd.f32 %v346_v37, %v314_v36 }
 0x2e2   :  { %v281_v39 = vpop.f32.mrf.mxu1 }
 0x2e3   :  { %v298_v40 = vadd.f32 %v290_v38, %v417_v1  ;;  %v282_v41 = vadd.f32 %v314_v36, %v281_v39 }
 0x2e4   :  { %v347_v42 = vpop.f32.mrf.mxu1 }
 0x2e5   :  { %302 = vst.msk [vmem:[%s501_s7 + $0x10] sm:$0xff] %vm31_vm0, %v298_v40  ;;  %v296_v43 = vadd.f32 %v282_v41, %v412_v0  ;;  %v293_v44 = vadd.f32 %v347_v42, %v314_v36 }
 0x2e6   :  { %v284_v45 = vpop.f32.mrf.mxu1 }
 0x2e7   :  { %300 = vst.msk [vmem:[%s501_s7] sm:$0xff] %vm31_vm0, %v296_v43  ;;  %v299_v46 = vadd.f32 %v293_v44, %v431_v5  ;;  %v285_v47 = vadd.f32 %v314_v36, %v284_v45 }
 0x2e9   :  { %303 = vst.msk [vmem:[%s501_s7 + $0x18] sm:$0xff] %vm31_vm0, %v299_v46  ;;  %v297_v1 = vadd.f32 %v285_v47, %v422_v2 }
 0x2eb   :  { %301 = vst.msk [vmem:[%s501_s7 + $0x8] sm:$0xff] %vm31_vm0, %v297_v1 }

// kernel: _lambda_.23
= control target key start
LH: loop header
LB: loop body
LE: loop exit
PB: predicated region body
PF: predicated region fallthrough
CT: control target
= control target key end

     0   :  { %vm23_vm0 = vcmask 254976   ;;  %s238_s0 = inlined_call_operand.vmem [shape: f32[2,32], index: 0, kind: input, shape index: {}]   ;;  %s239_s1 = inlined_call_operand.vmem [shape: f32[1,32], index: 1, kind: input, shape index: {}]   ;;  %s240_s2 = inlined_call_operand.vmem [shape: f32[1,32], index: 2, kind: input, shape index: {}]   ;;  %s241_s3 = inlined_call_operand.vmem [shape: bf16[32,10], index: 3, kind: input, shape index: {}]   ;;  %s242_s4 = inlined_call_operand.vmem [shape: f32[1,10], index: 4, kind: input, shape index: {}]   ;;  %s243_s5 = inlined_call_operand.hbm [shape: f32[2,10], index: 5, kind: output, shape index: {}]  }
   0x1   :  { %v22_v0 = vld [vmem:[%s238_s0] sm:$0x3] }
   0x2   :  { %v24_v1 = vsel %vm23_vm0, %v22_v0, 0.0 }
   0x3   :  { %25 = vadd.xlane.f32.xlu0 %v24_v1 }
   0x4   :  { %10 = vsyncpa [#allocation3], 0  ;;  %v158_v7 = vld [vmem:[%s241_s3 + $0x8] sm:$0xff]   ;;  %v184_v8 = vmov 0.0   ;;  %vm185_vm1 = vmmov 0   ;;  %v159_v9 = vld [vmem:[%s241_s3] sm:$0xff]  }
   0x5   :  { %147 = vmatprep.subr.bf16.mxu0 %v184_v8  ;;  %151 = vmatprep.mubr.msk.bf16.mxu0 %vm185_vm1, %v184_v8  ;;  %v138_v14 = vld [vmem:[%s239_s1] ss:$0 sm:$0xff]  ;;  %vm78_vm2 = vcmask 261120   ;;  %s186_s28 = smov [#allocation2]   ;;  %vm122_vm3 = vcmask 74752  }
   0x6   :  { %148 = vmatpush3.bf16.msra.mxu0 %v158_v7  ;;  %v139_v16 = vld [vmem:[%s240_s2] ss:$0 sm:$0xff]  ;;  %s130_s29 = sshll.u32 %s186_s28, 4  ;;  %s131_s29 = int_to_ptr.vmem [resolvable:$true] %s130_s29 }
   0x7   :  { %149 = vmatprep.subr.bf16.mxu0 %v184_v8  ;;  %v140_v20 = vld [vmem:[%s242_s4] ss:$0 sm:$0xff]  ;;  %s162_s1 = scalar_lea.vmem %s131_s29, 32  ;;  %p167_p1 = scmp.lt.s32.totalorder %s131_s29, %s131_s29 }
   0x8   :  { %p163_p0 = scmp.ne.s32.totalorder %s131_s29, %s162_s1  ;;  %p168_p2 = scmp.lt.s32.totalorder %s162_s1, %s162_s1 }
   0xa   :  { %150 = vmatpush3.bf16.msra.mxu0 %v159_v9  ;;  %p169_p3 = por %p168_p2, %p167_p1 }
   0xc   :  { %p170_p4 = pnand %p169_p3, %p163_p0 }
  0x8c   :  { %v26_v2 = vpop.xlane.xlu0 %25 }
  0x8d   :  { %v28_v3 = vmul.f32 0.03125, %v26_v2 }
  0x8f   :  { %v29_v4 = vsub.f32 %v22_v0, %v28_v3 }
  0x91   :  { %v30_v5 = vmul.f32 %v29_v4, %v29_v4 }
  0x93   :  { %v31_v6 = vsel %vm23_vm0, %v30_v5, 0.0 }
  0x94   :  { %32 = vadd.xlane.f32.xlu0 %v31_v6 }
 0x11d   :  { %v33_v10 = vpop.xlane.xlu0 %32 }
 0x11e   :  { %v34_v11 = vmul.f32 0.03125, %v33_v10 }
 0x120   :  { %v35_v12 = vadd.f32 1e-05, %v34_v11 }
 0x122   :  { %160 = vrsqrt.f32 %v35_v12 }
 0x12f   :  { %v161_v13 = vpop.eup %160 }
 0x130   :  { %v37_v15 = vmul.f32 %v161_v13, %v29_v4 }
 0x132   :  { %v45_v17 = vmul.f32 %v138_v14, %v37_v15 }
 0x134   :  { %v53_v18 = vadd.f32 %v139_v16, %v45_v17 }
 0x136   :  { %v54_v19 = vpack.c.bf16 %v53_v18, %v53_v18 }
 0x138   :  { %152 = vmatmul.mubr.msk.bf16.vlgmr.msra.gmra.mxu0 %vm78_vm2, %v54_v19 }
 0x1f8   :  { %v116_v21 = vpop.f32.mrf.mxu0 }
 0x1f9   :  { %v117_v22 = vadd.f32 %v140_v20, %v116_v21 }
 0x1fa   :  { %v153_v23 = vpop.f32.mrf.mxu0 }
 0x1fb   :  { %123 = vst.msk [vmem:[#allocation2] sm:$0x3] %vm122_vm3, %v117_v22 }
 0x1fc   :  { %v119_v24 = vpop.f32.mrf.mxu0 }
 0x1fd   :  { %173 = shalt.err (!%p170_p4)
}
 0x1fe   :  { %133 = dma.vmem_to_hbm [thread:$0]  %s131_s29, 32, %s243_s5, [#allocation3]   ;;  %v154_v25 = vpop.f32.mrf.mxu0 }
 0x1ff   :  { %182 = dma.done.wait [#allocation3], 32  }
 0x200   :  { %183 = vsyncadd [#allocation3], 4294967264 }
 0x201   :  { %137 = vsyncpa [#allocation3], 1 }

// kernel: _lambda_.16
= control target key start
LH: loop header
LB: loop body
LE: loop exit
PB: predicated region body
PF: predicated region fallthrough
CT: control target
= control target key end

     0   :  { %s844_s21 = smov 0   ;;  %s922_s0 = inlined_call_operand.vmem [shape: f32[2,5,32], index: 0, kind: input, shape index: {}]   ;;  %s923_s1 = inlined_call_operand.vmem [shape: f32[1,32], index: 1, kind: input, shape index: {}]   ;;  %s924_s2 = inlined_call_operand.vmem [shape: f32[1,32], index: 2, kind: input, shape index: {}]   ;;  %s925_s3 = inlined_call_operand.vmem [shape: bf16[32,48], index: 3, kind: input, shape index: {}]   ;;  %s926_s4 = inlined_call_operand.vmem [shape: bf16[16,32], index: 4, kind: input, shape index: {}]   ;;  %s927_s5 = inlined_call_operand.vmem [shape: f32[1,32], index: 5, kind: input, shape index: {}]   ;;  %s928_s6 = inlined_call_operand.vmem [shape: f32[2,5,32], index: 6, kind: output, shape index: {}]  }
   0x1 LB: > { %s690_s22 = sadd.s32 4294967295, %s798_s21   ;;  %p694_p0 = scmp.ge.s32.totalorder %s798_s21, 1  ;;  %s798_s21 = sphi %s844_s21, %s16_s21  }
   0x2   : > { %p211_p1 = scmp.lt.s32.totalorder %s798_s21, 3 }
   0x4   : > { %p212_p2 = pnand %p694_p0, %p211_p1 }
   0x5   : > { %p239_p3 = scmp.lt.s32.totalorder (!%p212_p2), %s690_s22, 1  ;;  %s802_s11 = smov (!%p212_p2), 120  }
   0x6   : > { %215 = sbr.rel (%p212_p2) target bundleno = 1670 (0x686), region = 44  ;;  %s803_s12 = smov (!%p212_p2), 112  }
   0x7   : > { %s804_s13 = smov (!%p212_p2), 104   ;;  %s805_s14 = smov (!%p212_p2), 88  }
   0x8   : > { %s806_s15 = smov (!%p212_p2), 96   ;;  %s808_s18 = smov (!%p212_p2), 8  }
   0xb   : > { %s930_s22 = smov (!%p239_p3, %s690_s22), 1  ;;  %vm249_vm0 = vcmask 258048   ;;  %v779_v7 = vld [vmem:[%s925_s3 + $0x8] sm:$0xff]   ;;  %v800_v8 = vmov 0.0   ;;  %vm801_vm1 = vmmov 0   ;;  %v780_v9 = vld [vmem:[%s925_s3] sm:$0xff]  }
   0xc   : > { %s695_s23 = sshll.u32 %s930_s22, 3  ;;  %724 = vmatprep.subr.bf16.mxu0 %v800_v8  ;;  %728 = vmatprep.mubr.msk.bf16.mxu0 %vm801_vm1, %v800_v8  ;;  %v697_v14 = vld [vmem:[%s923_s1] ss:$0 sm:$0xff]  ;;  %vm297_vm2 = vcmask 261120   ;;  %vm345_vm3 = vcmask 64512   ;;  %vm393_vm4 = vcmask 36864  }
   0xd   : > { %s242_s26 = scalar_lea.vmem %s922_s0, %s695_s23  ;;  %725 = vmatpush3.bf16.msra.mxu0 %v779_v7  ;;  %732 = vmatprep.subr.bf16.mxu1 %v800_v8  ;;  %v698_v16 = vld [vmem:[%s924_s2] ss:$0 sm:$0xff]  ;;  %vm412_vm5 = vcmask 1041408   ;;  %vm413_vm6 = vcmask 1042432   ;;  %v807_v54 = vmov 65535   ;;  %vm408_vm7 = vcmask 39936  }
   0xe   : > { %v860_v0 = vld [vmem:[%s242_s26] sm:$0x1f]  ;;  %726 = vmatprep.subr.bf16.mxu0 %v800_v8  ;;  %734 = vmatprep.mubr.msk.bf16.mxu1 %vm801_vm1, %v800_v8  ;;  %v414_v55 = vsel %vm412_vm5, 4294967295, %v807_v54  ;;  %vm591_vm8 = vcmask 130048   ;;  %s246_s26 = scalar_lea.vmem %s928_s6, %s695_s23 }
   0xf   : > { %v250_v1 = vsel %vm249_vm0, %v860_v0, 0.0  ;;  %v415_v56 = vsel %vm413_vm6, %v414_v55, 0 }
  0x10   : > { %251 = vadd.xlane.f32.xlu0 %v250_v1 }
  0x11   : > { %727 = vmatpush3.bf16.msra.mxu0 %v780_v9 }
  0x12   : > { %738 = vmatprep.subr.bf16.mxu0 %v800_v8 }
  0x99   : > { %v252_v2 = vpop.xlane.xlu0 %251 }
  0x9a   : > { %v254_v3 = vmul.f32 0.03125, %v252_v2 }
  0x9c   : > { %v255_v4 = vsub.f32 %v860_v0, %v254_v3 }
  0x9e   : > { %v256_v5 = vmul.f32 %v255_v4, %v255_v4 }
  0xa0   : > { %v257_v6 = vsel %vm249_vm0, %v256_v5, 0.0 }
  0xa1   : > { %258 = vadd.xlane.f32.xlu0 %v257_v6 }
 0x12a   : > { %v259_v10 = vpop.xlane.xlu0 %258 }
 0x12b   : > { %v260_v11 = vmul.f32 0.03125, %v259_v10 }
 0x12d   : > { %v261_v12 = vadd.f32 1e-05, %v260_v11 }
 0x12f   : > { %782 = vrsqrt.f32 %v261_v12 }
 0x13c   : > { %v783_v13 = vpop.eup %782 }
 0x13d   : > { %v263_v15 = vmul.f32 %v783_v13, %v255_v4  ;;  %v781_v4 = vld [vmem:[%s926_s4] sm:$0xff]  }
 0x13f   : > { %v271_v17 = vmul.f32 %v697_v14, %v263_v15 }
 0x141   : > { %v279_v18 = vadd.f32 %v698_v16, %v271_v17  ;;  %v706_v16 = vld [vmem:[%s927_s5] ss:$0 sm:$0xff] }
 0x143   : > { %v280_v19 = vpack.c.bf16 %v279_v18, %v279_v18 }
 0x145   : > { %729 = vmatmul.mubr.msk.bf16.vlgmr.msra.gmra.mxu0 %vm297_vm2, %v280_v19 }
 0x146   : > { %740 = vmatprep.mubr.msk.bf16.mxu0 %vm801_vm1, %v800_v8 }
 0x205   : > { %v335_v20 = vpop.f32.mrf.mxu0 }
 0x206   : > { %v341_v21 = vpack.c.bf16 %v335_v20, %v335_v20 }
 0x207   : > { %v730_v22 = vpop.f32.mrf.mxu0 }
 0x208   : > { %459 = vrot.lane.b32.xlu0 %v341_v21, %s802_s11  ;;  %343 = vrot.lane.b32.xlu1 %v341_v21, %s803_s12 }
 0x209   : > { %v338_v23 = vpop.f32.mrf.mxu0 }
 0x20b   : > { %v731_v24 = vpop.f32.mrf.mxu0 }
 0x20c   : > { %461 = vrot.lane.b32.xlu1 %v341_v21, %s804_s13 }
 0x27a   : > { %v344_v25 = vpop.permute.xlu1 %343  ;;  %v460_v29 = vpop.permute.xlu0 %459 }
 0x27b   : > { %v350_v26 = vsel %vm345_vm3, %v344_v25, 0 }
 0x27c   : > { %733 = vmatpush3.bf16.xpose.msra.mxu1 %v350_v26 }
 0x27d   : > { %744 = vmatprep.subr.bf16.mxu1 %v800_v8 }
 0x27e   : > { %v462_v27 = vpop.permute.xlu1 %461 }
 0x27f   : > { %v467_v28 = vsel %vm345_vm3, %v462_v27, 0 }
 0x283   : > { %735 = vmatmul.mubr.msk.bf16.vlgmr.msra.gmra.mxu1 %vm345_vm3, %v341_v21 }
 0x284   : > { %745 = vmatpush3.bf16.xpose.msra.mxu1 %v467_v28  ;;  %746 = vmatprep.mubr.msk.bf16.mxu1 %vm801_vm1, %v800_v8 }
 0x285   : > { %756 = vmatprep.subr.bf16.mxu1 %v800_v8 }
 0x28b   : > { %747 = vmatmul.mubr.msk.bf16.vlgmr.msra.gmra.mxu1 %vm345_vm3, %v460_v29 }
 0x28c   : > { %758 = vmatprep.mubr.msk.bf16.mxu1 %vm801_vm1, %v800_v8  ;;  %757 = vmatpush3.bf16.msra.mxu1 %v781_v4 }
 0x343   : > { %v386_v30 = vpop.f32.mrf.mxu1 }
 0x344   : > { %v392_v31 = vmul.f32 0.35355338, %v386_v30 }
 0x345   : > { %v736_v32 = vpop.f32.mrf.mxu1 }
 0x346   : > { %v394_v33 = vsel %vm393_vm4, %v392_v31, -inf }
 0x347   : > { %395 = vmax.xlane.f32.xlu1 %v394_v33  ;;  %v389_v34 = vpop.f32.mrf.mxu1 }
 0x349   : > { %v737_v35 = vpop.f32.mrf.mxu1 }
 0x34b   : > { %v503_v36 = vpop.f32.mrf.mxu1 }
 0x34c   : > { %v509_v37 = vmul.f32 0.35355338, %v503_v36 }
 0x34d   : > { %v748_v38 = vpop.f32.mrf.mxu1 }
 0x34e   : > { %v510_v39 = vsel %vm393_vm4, %v509_v37, -inf }
 0x34f   : > { %511 = vmax.xlane.f32.xlu0 %v510_v39  ;;  %v506_v40 = vpop.f32.mrf.mxu1 }
 0x351   : > { %v749_v41 = vpop.f32.mrf.mxu1 }
 0x365   : > { %522 = vrot.lane.b32.xlu0 %v341_v21, %s805_s14 }
 0x3d0   : > { %v396_v42 = vpop.xlane.xlu1 %395 }
 0x3d1   : > { %v397_v43 = vsub.f32 %v392_v31, %v396_v42 }
 0x3d3   : > { %v398_v44 = vmul.f32 1.442695, %v397_v43 }
 0x3d5   : > { %784 = vpow2.f32 %v398_v44 }
 0x3d8   : > { %v512_v45 = vpop.xlane.xlu0 %511 }
 0x3d9   : > { %v513_v46 = vsub.f32 %v509_v37, %v512_v45 }
 0x3db   : > { %v514_v47 = vmul.f32 1.442695, %v513_v46 }
 0x3dc   : > { %v523_v60 = vpop.permute.xlu0 %522 }
 0x3dd   : > { %786 = vpow2.f32 %v514_v47  ;;  %v528_v63 = vand.u32 %v523_v60, %v415_v56 }
 0x3e2   : > { %v785_v48 = vpop.eup %784 }
 0x3e3   : > { %v400_v49 = vsel %vm393_vm4, %v785_v48, 0.0 }
 0x3e4   : > { %401 = vadd.xlane.f32.xlu1 %v400_v49 }
 0x3ea   : > { %v787_v50 = vpop.eup %786 }
 0x3eb   : > { %v516_v51 = vsel %vm393_vm4, %v787_v50, 0.0 }
 0x3ec   : > { %517 = vadd.xlane.f32.xlu1 %v516_v51 }
 0x3fd   : > { %406 = vrot.lane.b32.xlu1 %v341_v21, %s806_s15 }
 0x46d   : > { %v402_v52 = vpop.xlane.xlu1 %401 }
 0x46e   : > { %788 = vrcp.f32 %v402_v52 }
 0x475   : > { %v518_v53 = vpop.xlane.xlu1 %517 }
 0x476   : > { %790 = vrcp.f32 %v518_v53 }
 0x479   : > { %v407_v57 = vpop.permute.xlu1 %406 }
 0x47a   : > { %v417_v58 = vand.u32 %v415_v56, %v407_v57 }
 0x47b   : > { %v789_v59 = vpop.eup %788 }
 0x47c   : > { %739 = vmatpush3.bf16.msra.mxu0 %v417_v58  ;;  %v404_v61 = vmul.f32 %v789_v59, %v785_v48 }
 0x47d   : > { %750 = vmatprep.subr.bf16.mxu0 %v800_v8 }
 0x47e   : > { %v405_v62 = vpack.c.bf16 %v404_v61, %v404_v61 }
 0x480   : > { %741 = vmatmul.mubr.msk.bf16.vlgmr.msra.gmra.mxu0 %vm408_vm7, %v405_v62 }
 0x481   : > { %751 = vmatpush3.bf16.msra.mxu0 %v528_v63  ;;  %752 = vmatprep.mubr.msk.bf16.mxu0 %vm801_vm1, %v800_v8 }
 0x483   : > { %v791_v1 = vpop.eup %790 }
 0x484   : > { %v520_v2 = vmul.f32 %v791_v1, %v787_v50 }
 0x486   : > { %v521_v3 = vpack.c.bf16 %v520_v2, %v520_v2 }
 0x488   : > { %753 = vmatmul.mubr.msk.bf16.vlgmr.msra.gmra.mxu0 %vm408_vm7, %v521_v3 }
 0x540   : > { %v453_v5 = vpop.f32.mrf.mxu0 }
 0x542   : > { %v742_v6 = vpop.f32.mrf.mxu0 }
 0x544   : > { %v456_v7 = vpop.f32.mrf.mxu0 }
 0x546   : > { %v743_v9 = vpop.f32.mrf.mxu0 }
 0x548   : > { %v564_v10 = vpop.f32.mrf.mxu0 }
 0x549   : > { %571 = vrot.lane.b32.xlu1 %v564_v10, %s808_s18 }
 0x54a   : > { %v754_v11 = vpop.f32.mrf.mxu0 }
 0x54c   : > { %v567_v12 = vpop.f32.mrf.mxu0 }
 0x54e   : > { %v755_v8 = vpop.f32.mrf.mxu0 }
 0x5bb   : > { %v572_v13 = vpop.permute.xlu1 %571 }
 0x5bc   : > { %v574_v14 = vsel %vm345_vm3, %v453_v5, %v572_v13 }
 0x5bd   : > { %v575_v15 = vpack.c.bf16 %v574_v14, %v574_v14 }
 0x5bf   : > { %759 = vmatmul.mubr.msk.bf16.vlgmr.msra.gmra.mxu1 %vm591_vm8, %v575_v15 }
 0x67f   : > { %v629_v17 = vpop.f32.mrf.mxu1 }
 0x680   : > { %v630_v18 = vadd.f32 %v706_v16, %v629_v17 }
 0x681   : > { %v760_v19 = vpop.f32.mrf.mxu1 }
 0x682   : > { %v635_v20 = vadd.f32 %v630_v18, %v860_v0 }
 0x683   : > { %v632_v21 = vpop.f32.mrf.mxu1 }
 0x684   : > { %636 = vst.msk [vmem:[%s246_s26] sm:$0x1f] %vm249_vm0, %v635_v20 }
 0x685   : > { %v761_v22 = vpop.f32.mrf.mxu1 }
 0x686 PF: > { %s16_s21 = sadd.s32 1, %s798_s21  }
 0x687   : > { %p13_p4 = scmp.ge.s32.totalorder %s16_s21, 4  }
 0x689   :  { %15 = sbr.rel (!%p13_p4) target bundleno = 1 (0x1), region = 74 }

// kernel: _lambda_.17
= control target key start
LH: loop header
LB: loop body
LE: loop exit
PB: predicated region body
PF: predicated region fallthrough
CT: control target
= control target key end

     0   :  { %vm29_vm0 = vcmask 261120   ;;  %vm33_vm1 = vcmask 254976   ;;  %v350_v14 = vmov 0.0   ;;  %vm351_vm2 = vmmov 0   ;;  %s463_s0 = inlined_call_operand.vmem [shape: f32[10,32], index: 0, kind: input, shape index: {}]   ;;  %s464_s3 = inlined_call_operand.vmem [shape: bf16[32,128], index: 3, kind: input, shape index: {}]   ;;  %s465_s5 = inlined_call_operand.vmem [shape: bf16[128,32], index: 5, kind: input, shape index: {}]   ;;  %s466_s1 = inlined_call_operand.vmem [shape: f32[1,32], index: 1, kind: input, shape index: {}]   ;;  %s467_s2 = inlined_call_operand.vmem [shape: f32[1,32], index: 2, kind: input, shape index: {}]   ;;  %s468_s4 = inlined_call_operand.vmem [shape: f32[1,128], index: 4, kind: input, shape index: {}]   ;;  %s469_s6 = inlined_call_operand.vmem [shape: f32[1,32], index: 6, kind: input, shape index: {}]   ;;  %s470_s7 = inlined_call_operand.vmem [shape: f32[10,32], index: 7, kind: output, shape index: {}]  }
   0x1   :  { %v395_v0 = vld [vmem:[%s463_s0] sm:$0xff]  ;;  %v400_v1 = vld [vmem:[%s463_s0 + $0x8] sm:$0x3]  ;;  %302 = vmatprep.subr.bf16.mxu0 %v350_v14  ;;  %306 = vmatprep.mubr.msk.bf16.mxu0 %vm351_vm2, %v350_v14  ;;  %v334_v17 = vld [vmem:[%s465_s5 + $0x38] sm:$0xff]  }
   0x2   :  { %v30_v2 = vsel %vm29_vm0, %v395_v0, 0.0  ;;  %v34_v3 = vsel %vm33_vm1, %v400_v1, 0.0  ;;  %v332_v15 = vld [vmem:[%s464_s3 + $0x8] sm:$0xff]   ;;  %310 = vmatprep.subr.bf16.mxu1 %v350_v14  ;;  %326 = vmatprep.mubr.msk.bf16.mxu1 %vm351_vm2, %v350_v14  ;;  %v333_v16 = vld [vmem:[%s464_s3] sm:$0xff]   ;;  %v335_v35 = vld [vmem:[%s465_s5 + $0x30] sm:$0xff]  }
   0x3   :  { %31 = vadd.xlane.f32.xlu0 %v30_v2  ;;  %303 = vmatpush3.bf16.msra.mxu0 %v332_v15  ;;  %v275_v26 = vld [vmem:[%s466_s1] ss:$0 sm:$0xff]  ;;  %v336_v36 = vld [vmem:[%s465_s5 + $0x28] sm:$0xff]   ;;  %v338_v38 = vld [vmem:[%s465_s5 + $0x18] sm:$0xff]  }
   0x4   :  { %304 = vmatprep.subr.bf16.mxu0 %v350_v14  ;;  %311 = vmatpush3.bf16.msra.mxu1 %v334_v17  ;;  %v276_v30 = vld [vmem:[%s467_s2] ss:$0 sm:$0xff]  ;;  %v339_v39 = vld [vmem:[%s465_s5 + $0x10] sm:$0xff]   ;;  %v340_v40 = vld [vmem:[%s465_s5 + $0x8] sm:$0xff]  }
   0x5   :  { %312 = vmatprep.subr.bf16.mxu1 %v350_v14  ;;  %v337_v37 = vld [vmem:[%s465_s5 + $0x20] sm:$0xff]  }
   0x6   :  { %v341_v41 = vld [vmem:[%s465_s5] sm:$0xff]  }
   0x7   :  { %35 = vadd.xlane.f32.xlu0 %v34_v3  ;;  %305 = vmatpush3.bf16.msra.mxu0 %v333_v16  ;;  %v277_v42 = vld [vmem:[%s468_s4] ss:$0 sm:$0xff] }
   0x8   :  { %313 = vmatpush3.bf16.msra.mxu1 %v335_v35  ;;  %v281_v60 = vld [vmem:[%s469_s6] ss:$0 sm:$0xff] }
   0x9   :  { %314 = vmatprep.subr.bf16.mxu1 %v350_v14 }
   0xc   :  { %315 = vmatpush3.bf16.msra.mxu1 %v336_v36 }
   0xd   :  { %316 = vmatprep.subr.bf16.mxu1 %v350_v14 }
  0x10   :  { %317 = vmatpush3.bf16.msra.mxu1 %v337_v37 }
  0x11   :  { %318 = vmatprep.subr.bf16.mxu1 %v350_v14 }
  0x14   :  { %319 = vmatpush3.bf16.msra.mxu1 %v338_v38 }
  0x15   :  { %320 = vmatprep.subr.bf16.mxu1 %v350_v14 }
  0x18   :  { %321 = vmatpush3.bf16.msra.mxu1 %v339_v39 }
  0x19   :  { %322 = vmatprep.subr.bf16.mxu1 %v350_v14 }
  0x1c   :  { %323 = vmatpush3.bf16.msra.mxu1 %v340_v40 }
  0x1d   :  { %324 = vmatprep.subr.bf16.mxu1 %v350_v14 }
  0x20   :  { %325 = vmatpush3.bf16.msra.mxu1 %v341_v41 }
  0x8c   :  { %v32_v4 = vpop.xlane.xlu0 %31 }
  0x8d   :  { %v38_v5 = vmul.f32 0.03125, %v32_v4 }
  0x8f   :  { %v40_v6 = vsub.f32 %v395_v0, %v38_v5 }
  0x90   :  { %v36_v7 = vpop.xlane.xlu0 %35 }
  0x91   :  { %v39_v8 = vmul.f32 0.03125, %v36_v7  ;;  %v42_v9 = vmul.f32 %v40_v6, %v40_v6 }
  0x93   :  { %v41_v10 = vsub.f32 %v400_v1, %v39_v8  ;;  %v44_v11 = vsel %vm29_vm0, %v42_v9, 0.0 }
  0x94   :  { %45 = vadd.xlane.f32.xlu1 %v44_v11 }
  0x95   :  { %v43_v12 = vmul.f32 %v41_v10, %v41_v10 }
  0x97   :  { %v47_v13 = vsel %vm33_vm1, %v43_v12, 0.0 }
  0x98   :  { %48 = vadd.xlane.f32.xlu1 %v47_v13 }
 0x11d   :  { %v46_v18 = vpop.xlane.xlu1 %45 }
 0x11e   :  { %v50_v19 = vmul.f32 0.03125, %v46_v18 }
 0x120   :  { %v52_v20 = vadd.f32 1e-05, %v50_v19 }
 0x121   :  { %v49_v21 = vpop.xlane.xlu1 %48 }
 0x122   :  { %342 = vrsqrt.f32 %v52_v20  ;;  %v51_v22 = vmul.f32 0.03125, %v49_v21 }
 0x124   :  { %v53_v23 = vadd.f32 1e-05, %v51_v22 }
 0x126   :  { %344 = vrsqrt.f32 %v53_v23 }
 0x12f   :  { %v343_v24 = vpop.eup %342 }
 0x130   :  { %v56_v25 = vmul.f32 %v343_v24, %v40_v6 }
 0x132   :  { %v65_v29 = vmul.f32 %v275_v26, %v56_v25 }
 0x133   :  { %v345_v27 = vpop.eup %344 }
 0x134   :  { %v57_v28 = vmul.f32 %v345_v27, %v41_v10  ;;  %v74_v32 = vadd.f32 %v276_v30, %v65_v29 }
 0x136   :  { %v66_v31 = vmul.f32 %v275_v26, %v57_v28 }
 0x138   :  { %v75_v33 = vadd.f32 %v276_v30, %v66_v31 }
 0x13a   :  { %v76_v34 = vpack.c.bf16 %v75_v33, %v74_v32 }
 0x13c   :  { %307 = vmatmul.mubr.msk.bf16.vlgmr.msra.gmra.mxu0 %vm29_vm0, %v76_v34 }
 0x1fc   :  { %v137_v43 = vpop.f32.mrf.mxu0 }
 0x1fd   :  { %v138_v44 = vadd.f32 %v277_v42, %v137_v43 }
 0x1fe   :  { %v308_v45 = vpop.f32.mrf.mxu0 }
 0x1ff   :  { %v146_v46 = vmul.f32 0.70710677, %v138_v44  ;;  %v144_v54 = vmul.f32 0.5, %v138_v44 }
 0x200   :  { %v140_v47 = vpop.f32.mrf.mxu0 }
 0x201   :  { %346 = verf.f32 %v146_v46  ;;  %v141_v48 = vadd.f32 %v277_v42, %v140_v47 }
 0x202   :  { %v309_v49 = vpop.f32.mrf.mxu0 }
 0x203   :  { %v147_v50 = vmul.f32 0.70710677, %v141_v48  ;;  %v145_v55 = vmul.f32 0.5, %v141_v48 }
 0x205   :  { %348 = verf.f32 %v147_v50 }
 0x20e   :  { %v347_v51 = vpop.eup %346 }
 0x20f   :  { %v150_v52 = vadd.f32 1.0, %v347_v51 }
 0x211   :  { %v152_v57 = vmul.f32 %v150_v52, %v144_v54 }
 0x212   :  { %v349_v53 = vpop.eup %348 }
 0x213   :  { %v151_v56 = vadd.f32 1.0, %v349_v53 }
 0x215   :  { %v153_v58 = vmul.f32 %v151_v56, %v145_v55 }
 0x217   :  { %v154_v59 = vpack.c.bf16 %v153_v58, %v152_v57 }
 0x219   :  { %327 = vmatmul.mubr.bf16.vlgmr.msra.gmra.mxu1 %v154_v59 }
 0x2d9   :  { %v260_v61 = vpop.f32.mrf.mxu1 }
 0x2da   :  { %v261_v62 = vadd.f32 %v281_v60, %v260_v61 }
 0x2db   :  { %v328_v63 = vpop.f32.mrf.mxu1 }
 0x2dc   :  { %v267_v2 = vadd.f32 %v261_v62, %v395_v0 }
 0x2dd   :  { %v263_v3 = vpop.f32.mrf.mxu1 }
 0x2de   :  { %269 = vst.msk [vmem:[%s470_s7] sm:$0xff] %vm29_vm0, %v267_v2  ;;  %v264_v4 = vadd.f32 %v281_v60, %v263_v3 }
 0x2df   :  { %v329_v5 = vpop.f32.mrf.mxu1 }
 0x2e0   :  { %v268_v6 = vadd.f32 %v264_v4, %v400_v1 }
 0x2e2   :  { %270 = vst.msk [vmem:[%s470_s7 + $0x8] sm:$0x3] %vm33_vm1, %v268_v6 }

</bundles_post_ra>
